<compile_context>
chip_gen: v6e
topology: v6e:2x2x1
jax: 0.10.0
libtpu: 0.0.40
codegen_flags: <defaults>
</compile_context>

<pallas_src>
from functools import partial

import numpy as np
import jax
import jax.numpy as jnp
from jax.experimental import pallas as pl
from jax.experimental.pallas import tpu as pltpu


# ------------------------------ Pallas kernel -------------------------------

def class_attention_kernel(x_ref, wq_ref, bq_ref, wkv_ref, bkv_ref,
                           wp_ref, bp_ref, mask_ref, o_ref, *, scale, b_block):
    f32 = jnp.float32
    _, N, C = x_ref.shape

    x_blk = x_ref[...]                                  # (bB, N, C)  matmul dtype
    x2d = x_blk.reshape(b_block * N, C)                 # (bB*N, C)
    x_cls = x_blk[:, 0, :]                              # (bB, C)  cls tokens only

    # ---- kv projection for all tokens of all batches in the block ----------
    # The one big matmul (~97% of FLOPs); f32 accumulation on the MXU.
    kv = jnp.dot(x2d, wkv_ref[...],
                 preferred_element_type=f32) + bkv_ref[...]        # (bB*N, 2C)

    # ---- q projection of the cls tokens, softmax scale folded into q -------
    q = (jnp.dot(x_cls, wq_ref[...],
                 preferred_element_type=f32) + bq_ref[...]) * scale  # (bB, C)

    head_mask = mask_ref[...]                           # (H, C) block-diag selector

    # ---- per-batch scores / softmax / readout (tiny), static unroll --------
    cls_rows = []
    for b in range(b_block):
        k_b = kv[b * N:(b + 1) * N, :C]                 # (N, C)  lane layout h*hd+d
        v_b = kv[b * N:(b + 1) * N, C:]                 # (N, C)

        # Row h of q_bd holds q restricted to head h's channel block, so
        # q_bd @ k^T yields exactly the per-head dot products in one
        # lane-dense matmul (equivalent to pl.dot(..., trans_b=True)).
        q_bd = q[b:b + 1, :] * head_mask                # (H, C)
        s = jax.lax.dot_general(q_bd, k_b, (((1,), (1,)), ((), ())),
                                preferred_element_type=f32)         # (H, N)

        # softmax over keys (lane axis); reciprocal rides the EUP slot.
        s = s - jnp.max(s, axis=-1, keepdims=True)
        p = jnp.exp(s)
        p = p * pl.reciprocal(jnp.sum(p, axis=-1, keepdims=True), approx=True)

        # readout: (H, N) @ (N, C) -> (H, C); keep head h's channel block.
        ctx = jnp.dot(p, v_b, preferred_element_type=f32)            # (H, C)
        cls_rows.append(jnp.sum(ctx * head_mask, axis=0, keepdims=True))  # (1, C)

    cls = jnp.concatenate(cls_rows, axis=0)             # (bB, C)

    # ---- output projection for the whole batch block ------------------------
    out = jnp.dot(cls.astype(wp_ref.dtype), wp_ref[...],
                  preferred_element_type=f32) + bp_ref[...]          # (bB, C)
    o_ref[...] = out.reshape(b_block, 1, C).astype(o_ref.dtype)


# ------------------------------ wrapper --------------------------------------

def _pick_b_block(B, max_b_block=8):
    """Largest divisor of B (capped) that still leaves >= 2 grid steps, so
    dimension_semantics=("parallel",) can shard across both v7x TensorCores.
    On single-core v5e, pass b_block=B explicitly to collapse to one step."""
    if B <= 1:
        return 1
    best = 1
    for d in range(1, min(B // 2, max_b_block) + 1):
        if B % d == 0:
            best = d
    return best


def class_attention(x, params, *, num_heads, matmul_dtype=jnp.bfloat16,
                    b_block=None):
    B, N, C = x.shape
    assert C % num_heads == 0, "head_dim must divide C"
    hd = C // num_heads
    scale = hd ** (-0.5)
    out_dtype = x.dtype

    if b_block is None:
        b_block = _pick_b_block(B)
    assert B % b_block == 0
    num_blocks = B // b_block

    # Pre-cast MXU operands ONCE outside the kernel (bf16 in production):
    # halves weight/x DMA bytes and removes per-step converts of the
    # VMEM-resident weights.  Biases stay f32 (added to f32 accumulators).
    x_in = x.astype(matmul_dtype)
    wq = params['q_w'].astype(matmul_dtype)
    wkv = params['kv_w'].astype(matmul_dtype)
    wp = params['proj_w'].astype(matmul_dtype)
    bq = params['q_b'].astype(jnp.float32)
    bkv = params['kv_b'].astype(jnp.float32)
    bp = params['proj_b'].astype(jnp.float32)

    # Hoisted block-diagonal head selector: mask[h, c] = (c // hd == h).
    head_mask = (jnp.arange(C, dtype=jnp.int32)[None, :] // hd
                 == jnp.arange(num_heads, dtype=jnp.int32)[:, None]
                 ).astype(jnp.float32)                  # (H, C)

    kernel = partial(class_attention_kernel, scale=scale, b_block=b_block)

    return pl.pallas_call(
        kernel,
        out_shape=jax.ShapeDtypeStruct((B, 1, C), out_dtype),
        grid=(num_blocks,),
        in_specs=[
            pl.BlockSpec((b_block, N, C), lambda i: (i, 0, 0)),   # x (b_block batches / step)
            pl.BlockSpec((C, C), lambda i: (0, 0)),               # q weight   (VMEM resident)
            pl.BlockSpec((1, C), lambda i: (0, 0)),               # q bias
            pl.BlockSpec((C, 2 * C), lambda i: (0, 0)),           # kv weight  (VMEM resident)
            pl.BlockSpec((1, 2 * C), lambda i: (0, 0)),           # kv bias
            pl.BlockSpec((C, C), lambda i: (0, 0)),               # proj weight
            pl.BlockSpec((1, C), lambda i: (0, 0)),               # proj bias
            pl.BlockSpec((num_heads, C), lambda i: (0, 0)),       # head mask  (constant)
        ],
        out_specs=pl.BlockSpec((b_block, 1, C), lambda i: (i, 0, 0)),
        compiler_params=pltpu.CompilerParams(
            dimension_semantics=("parallel",)),
    )(x_in, wq, bq, wkv, bkv, wp, bp, head_mask)


# ------------------------------ reference ------------------------------------

def class_attention_ref(x, params, num_heads):
    """Pure-jnp transcription of the PyTorch forward (weights stored as (in, out))."""
    B, N, C = x.shape
    hd = C // num_heads
    scale = hd ** (-0.5)
    kv = x @ params['kv_w'] + params['kv_b']                       # (B, N, 2C)
    kv = kv.reshape(B, N, 2, num_heads, hd).transpose(2, 0, 3, 1, 4)
    k, v = kv[0], kv[1]                                            # (B, H, N, hd)
    q = (x[:, :1, :] @ params['q_w'] + params['q_b']).reshape(B, num_heads, 1, hd)
    attn = (q * scale) @ jnp.swapaxes(k, -2, -1)                   # (B, H, 1, N)
    attn = jax.nn.softmax(attn, axis=-1)
    cls = (attn @ v).transpose(0, 2, 1, 3).reshape(B, 1, C)
    return cls @ params['proj_w'] + params['proj_b']


# ------------------------------ parameters -----------------------------------

def init_params(key, C):
    """trunc_normal(std=0.02) weights, zero biases (matches _init_weights).
    Weights are stored transposed, (in, out), so x @ W == PyTorch x @ W.T."""
    ks = jax.random.split(key, 3)

    def trunc(k, shape, std=0.02):
        return (std * jax.random.truncated_normal(k, -2.0, 2.0, shape)).astype(jnp.float32)

    return {
        'q_w': trunc(ks[0], (C, C)),
        'q_b': jnp.zeros((1, C), jnp.float32),
        'kv_w': trunc(ks[1], (C, 2 * C)),
        'kv_b': jnp.zeros((1, 2 * C), jnp.float32),
        'proj_w': trunc(ks[2], (C, C)),
        'proj_b': jnp.zeros((1, C), jnp.float32),
    }


# --------------------------------- main ---------------------------------------

if __name__ == "__main__":
    key = jax.random.PRNGKey(0)
    B, N, C, num_heads = 4, 256, 128, 4          # small, lane-aligned (C = 128)

    k_x, k_p = jax.random.split(key)
    x = jax.random.normal(k_x, (B, N, C), jnp.float32)
    params = init_params(k_p, C)

    ref = class_attention_ref(x, params, num_heads)

    # f32 MXU operands: tight numerics check vs. the f32 reference.
    fwd_f32 = jax.jit(partial(class_attention, num_heads=num_heads,
                              matmul_dtype=jnp.float32))
    out_f32 = fwd_f32(x, params)
    jax.block_until_ready(out_f32)
    np.testing.assert_allclose(np.asarray(out_f32), np.asarray(ref),
                               rtol=5e-2, atol=1e-4)

    # bf16 MXU operands: the production setting (weights/activations pre-cast
    # once in the wrapper, f32 accumulation inside the kernel).
    fwd_bf16 = jax.jit(partial(class_attention, num_heads=num_heads,
                               matmul_dtype=jnp.bfloat16))
    out_bf16 = fwd_bf16(x, params)
    jax.block_until_ready(out_bf16)
    np.testing.assert_allclose(np.asarray(out_bf16), np.asarray(ref),
                               rtol=5e-2, atol=5e-2)

    assert out_f32.shape == (B, 1, C) and out_f32.dtype == jnp.float32
    print("KERNEL_OK")
</pallas_src>

<mosaic_0001>
module attributes {stable_mosaic.version = 11 : i64} {
  func.func @class_attention_kernel(%arg0: i32, %arg1: memref<2x256x128xf32, #tpu.memory_space<vmem>>, %arg2: memref<128x128xf32, #tpu.memory_space<vmem>>, %arg3: memref<1x128xf32, #tpu.memory_space<vmem>>, %arg4: memref<128x256xf32, #tpu.memory_space<vmem>>, %arg5: memref<1x256xf32, #tpu.memory_space<vmem>>, %arg6: memref<128x128xf32, #tpu.memory_space<vmem>>, %arg7: memref<1x128xf32, #tpu.memory_space<vmem>>, %arg8: memref<4x128xf32, #tpu.memory_space<vmem>>, %arg9: memref<2x1x128xf32, #tpu.memory_space<vmem>>) attributes {dimension_semantics = [#tpu.dimension_semantics<parallel>], iteration_bounds = array<i64: 2>, scalar_prefetch = 0 : i64, scratch_operands = 0 : i64, tpu.core_type = #tpu.core_type<tc>, window_params = [{transform_indices = @transform_0, window_bounds = array<i64: 2, 256, 128>}, {pipeline_mode = #tpu.pipeline_mode<synchronous>, transform_indices = @transform_1, window_bounds = array<i64: 128, 128>}, {pipeline_mode = #tpu.pipeline_mode<synchronous>, transform_indices = @transform_2, window_bounds = array<i64: 1, 128>}, {pipeline_mode = #tpu.pipeline_mode<synchronous>, transform_indices = @transform_3, window_bounds = array<i64: 128, 256>}, {pipeline_mode = #tpu.pipeline_mode<synchronous>, transform_indices = @transform_4, window_bounds = array<i64: 1, 256>}, {pipeline_mode = #tpu.pipeline_mode<synchronous>, transform_indices = @transform_5, window_bounds = array<i64: 128, 128>}, {pipeline_mode = #tpu.pipeline_mode<synchronous>, transform_indices = @transform_6, window_bounds = array<i64: 1, 128>}, {pipeline_mode = #tpu.pipeline_mode<synchronous>, transform_indices = @transform_7, window_bounds = array<i64: 4, 128>}, {transform_indices = @transform_8, window_bounds = array<i64: 2, 1, 128>}]} {
    %c0 = arith.constant 0 : index
    %c0_0 = arith.constant 0 : index
    %c0_1 = arith.constant 0 : index
    %0 = vector.load %arg1[%c0, %c0_0, %c0_1] : memref<2x256x128xf32, #tpu.memory_space<vmem>>, vector<2x256x128xf32>
    %1 = vector.shape_cast %0 : vector<2x256x128xf32> to vector<512x128xf32>
    %2 = vector.extract_strided_slice %0 {offsets = [0, 0, 0], sizes = [2, 1, 128], strides = [1, 1, 1]} : vector<2x256x128xf32> to vector<2x1x128xf32>
    %3 = vector.shape_cast %2 : vector<2x1x128xf32> to vector<2x128xf32>
    %c0_2 = arith.constant 0 : index
    %c0_3 = arith.constant 0 : index
    %4 = vector.load %arg4[%c0_2, %c0_3] : memref<128x256xf32, #tpu.memory_space<vmem>>, vector<128x256xf32>
    %cst = arith.constant dense<0.000000e+00> : vector<512x256xf32>
    %5 = tpu.matmul %1, %4, %cst {dimension_numbers = #tpu.dot_dimension_numbers<[1], [0], [0], [1], [0, 0, 1, 1], [], []>} : vector<512x128xf32>, vector<128x256xf32>, vector<512x256xf32> -> vector<512x256xf32>
    %c0_4 = arith.constant 0 : index
    %c0_5 = arith.constant 0 : index
    %6 = vector.load %arg5[%c0_4, %c0_5] : memref<1x256xf32, #tpu.memory_space<vmem>>, vector<1x256xf32>
    %7 = vector.broadcast %6 : vector<1x256xf32> to vector<512x256xf32>
    %8 = arith.addf %5, %7 : vector<512x256xf32>
    %c0_6 = arith.constant 0 : index
    %c0_7 = arith.constant 0 : index
    %9 = vector.load %arg2[%c0_6, %c0_7] : memref<128x128xf32, #tpu.memory_space<vmem>>, vector<128x128xf32>
    %cst_8 = arith.constant dense<0.000000e+00> : vector<2x128xf32>
    %10 = tpu.matmul %3, %9, %cst_8 {dimension_numbers = #tpu.dot_dimension_numbers<[1], [0], [0], [1], [0, 0, 1, 1], [], []>} : vector<2x128xf32>, vector<128x128xf32>, vector<2x128xf32> -> vector<2x128xf32>
    %c0_9 = arith.constant 0 : index
    %c0_10 = arith.constant 0 : index
    %11 = vector.load %arg3[%c0_9, %c0_10] : memref<1x128xf32, #tpu.memory_space<vmem>>, vector<1x128xf32>
    %12 = vector.broadcast %11 : vector<1x128xf32> to vector<2x128xf32>
    %13 = arith.addf %10, %12 : vector<2x128xf32>
    %cst_11 = arith.constant 0.176776692 : f32
    %14 = vector.broadcast %cst_11 : f32 to vector<2x128xf32>
    %15 = arith.mulf %13, %14 : vector<2x128xf32>
    %c0_12 = arith.constant 0 : index
    %c0_13 = arith.constant 0 : index
    %16 = vector.load %arg8[%c0_12, %c0_13] : memref<4x128xf32, #tpu.memory_space<vmem>>, vector<4x128xf32>
    %17 = vector.extract_strided_slice %8 {offsets = [0, 0], sizes = [256, 128], strides = [1, 1]} : vector<512x256xf32> to vector<256x128xf32>
    %18 = vector.extract_strided_slice %8 {offsets = [0, 128], sizes = [256, 128], strides = [1, 1]} : vector<512x256xf32> to vector<256x128xf32>
    %19 = vector.extract_strided_slice %15 {offsets = [0, 0], sizes = [1, 128], strides = [1, 1]} : vector<2x128xf32> to vector<1x128xf32>
    %20 = vector.broadcast %19 : vector<1x128xf32> to vector<4x128xf32>
    %21 = arith.mulf %20, %16 : vector<4x128xf32>
    %cst_14 = arith.constant dense<0.000000e+00> : vector<4x256xf32>
    %22 = tpu.matmul %21, %17, %cst_14 {dimension_numbers = #tpu.dot_dimension_numbers<[1], [1], [0], [0], [0, 0, 1, 0], [], []>} : vector<4x128xf32>, vector<256x128xf32>, vector<4x256xf32> -> vector<4x256xf32>
    %cst_15 = arith.constant dense<0xFF800000> : vector<4xf32>
    %23 = vector.multi_reduction <maximumf>, %22, %cst_15 [1] : vector<4x256xf32> to vector<4xf32>
    %24 = vector.shape_cast %23 : vector<4xf32> to vector<4x1xf32>
    %25 = vector.broadcast %24 : vector<4x1xf32> to vector<4x256xf32>
    %26 = arith.subf %22, %25 : vector<4x256xf32>
    %27 = math.exp %26 : vector<4x256xf32>
    %cst_16 = arith.constant dense<0.000000e+00> : vector<4xf32>
    %28 = vector.multi_reduction <add>, %27, %cst_16 [1] : vector<4x256xf32> to vector<4xf32>
    %29 = vector.shape_cast %28 : vector<4xf32> to vector<4x1xf32>
    %30 = tpu.reciprocal %29 {approx = true} : vector<4x1xf32> -> vector<4x1xf32>
    %31 = vector.broadcast %30 : vector<4x1xf32> to vector<4x256xf32>
    %32 = arith.mulf %27, %31 : vector<4x256xf32>
    %cst_17 = arith.constant dense<0.000000e+00> : vector<4x128xf32>
    %33 = tpu.matmul %32, %18, %cst_17 {dimension_numbers = #tpu.dot_dimension_numbers<[1], [0], [0], [1], [0, 0, 1, 1], [], []>} : vector<4x256xf32>, vector<256x128xf32>, vector<4x128xf32> -> vector<4x128xf32>
    %34 = arith.mulf %33, %16 : vector<4x128xf32>
    %cst_18 = arith.constant dense<0.000000e+00> : vector<128xf32>
    %35 = vector.multi_reduction <add>, %34, %cst_18 [0] : vector<4x128xf32> to vector<128xf32>
    %36 = vector.shape_cast %35 : vector<128xf32> to vector<1x128xf32>
    %37 = vector.extract_strided_slice %8 {offsets = [256, 0], sizes = [256, 128], strides = [1, 1]} : vector<512x256xf32> to vector<256x128xf32>
    %38 = vector.extract_strided_slice %8 {offsets = [256, 128], sizes = [256, 128], strides = [1, 1]} : vector<512x256xf32> to vector<256x128xf32>
    %39 = vector.extract_strided_slice %15 {offsets = [1, 0], sizes = [1, 128], strides = [1, 1]} : vector<2x128xf32> to vector<1x128xf32>
    %40 = vector.broadcast %39 : vector<1x128xf32> to vector<4x128xf32>
    %41 = arith.mulf %40, %16 : vector<4x128xf32>
    %cst_19 = arith.constant dense<0.000000e+00> : vector<4x256xf32>
    %42 = tpu.matmul %41, %37, %cst_19 {dimension_numbers = #tpu.dot_dimension_numbers<[1], [1], [0], [0], [0, 0, 1, 0], [], []>} : vector<4x128xf32>, vector<256x128xf32>, vector<4x256xf32> -> vector<4x256xf32>
    %cst_20 = arith.constant dense<0xFF800000> : vector<4xf32>
    %43 = vector.multi_reduction <maximumf>, %42, %cst_20 [1] : vector<4x256xf32> to vector<4xf32>
    %44 = vector.shape_cast %43 : vector<4xf32> to vector<4x1xf32>
    %45 = vector.broadcast %44 : vector<4x1xf32> to vector<4x256xf32>
    %46 = arith.subf %42, %45 : vector<4x256xf32>
    %47 = math.exp %46 : vector<4x256xf32>
    %cst_21 = arith.constant dense<0.000000e+00> : vector<4xf32>
    %48 = vector.multi_reduction <add>, %47, %cst_21 [1] : vector<4x256xf32> to vector<4xf32>
    %49 = vector.shape_cast %48 : vector<4xf32> to vector<4x1xf32>
    %50 = tpu.reciprocal %49 {approx = true} : vector<4x1xf32> -> vector<4x1xf32>
    %51 = vector.broadcast %50 : vector<4x1xf32> to vector<4x256xf32>
    %52 = arith.mulf %47, %51 : vector<4x256xf32>
    %cst_22 = arith.constant dense<0.000000e+00> : vector<4x128xf32>
    %53 = tpu.matmul %52, %38, %cst_22 {dimension_numbers = #tpu.dot_dimension_numbers<[1], [0], [0], [1], [0, 0, 1, 1], [], []>} : vector<4x256xf32>, vector<256x128xf32>, vector<4x128xf32> -> vector<4x128xf32>
    %54 = arith.mulf %53, %16 : vector<4x128xf32>
    %cst_23 = arith.constant dense<0.000000e+00> : vector<128xf32>
    %55 = vector.multi_reduction <add>, %54, %cst_23 [0] : vector<4x128xf32> to vector<128xf32>
    %56 = vector.shape_cast %55 : vector<128xf32> to vector<1x128xf32>
    %57 = tpu.concatenate %36, %56 in 0 : vector<1x128xf32>, vector<1x128xf32> -> vector<2x128xf32>
    %c0_24 = arith.constant 0 : index
    %c0_25 = arith.constant 0 : index
    %58 = vector.load %arg6[%c0_24, %c0_25] : memref<128x128xf32, #tpu.memory_space<vmem>>, vector<128x128xf32>
    %cst_26 = arith.constant dense<0.000000e+00> : vector<2x128xf32>
    %59 = tpu.matmul %57, %58, %cst_26 {dimension_numbers = #tpu.dot_dimension_numbers<[1], [0], [0], [1], [0, 0, 1, 1], [], []>} : vector<2x128xf32>, vector<128x128xf32>, vector<2x128xf32> -> vector<2x128xf32>
    %c0_27 = arith.constant 0 : index
    %c0_28 = arith.constant 0 : index
    %60 = vector.load %arg7[%c0_27, %c0_28] : memref<1x128xf32, #tpu.memory_space<vmem>>, vector<1x128xf32>
    %61 = vector.broadcast %60 : vector<1x128xf32> to vector<2x128xf32>
    %62 = arith.addf %59, %61 : vector<2x128xf32>
    %63 = vector.shape_cast %62 : vector<2x128xf32> to vector<2x1x128xf32>
    %c0_29 = arith.constant 0 : index
    %c0_30 = arith.constant 0 : index
    %c0_31 = arith.constant 0 : index
    %64 = vector.load %arg9[%c0_29, %c0_30, %c0_31] : memref<2x1x128xf32, #tpu.memory_space<vmem>>, vector<2x1x128xf32>
    tpu.vector_store %arg9[%c0_29, %c0_30, %c0_31], %63 {strides = array<i32>} : memref<2x1x128xf32, #tpu.memory_space<vmem>>, vector<2x1x128xf32>,
    return
  }
  func.func @transform_0(%arg0: i32) -> (i32, i32, i32) {
    %c0_i32 = arith.constant 0 : i32
    %c0_i32_0 = arith.constant 0 : i32
    %c0_i32_1 = arith.constant 0 : i32
    return %arg0, %c0_i32, %c0_i32_0 : i32, i32, i32
  }
  func.func @transform_1(%arg0: i32) -> (i32, i32) {
    %c0_i32 = arith.constant 0 : i32
    %c0_i32_0 = arith.constant 0 : i32
    %c0_i32_1 = arith.constant 0 : i32
    return %c0_i32, %c0_i32_0 : i32, i32
  }
  func.func @transform_2(%arg0: i32) -> (i32, i32) {
    %c0_i32 = arith.constant 0 : i32
    %c0_i32_0 = arith.constant 0 : i32
    %c0_i32_1 = arith.constant 0 : i32
    return %c0_i32, %c0_i32_0 : i32, i32
  }
  func.func @transform_3(%arg0: i32) -> (i32, i32) {
    %c0_i32 = arith.constant 0 : i32
    %c0_i32_0 = arith.constant 0 : i32
    %c0_i32_1 = arith.constant 0 : i32
    return %c0_i32, %c0_i32_0 : i32, i32
  }
  func.func @transform_4(%arg0: i32) -> (i32, i32) {
    %c0_i32 = arith.constant 0 : i32
    %c0_i32_0 = arith.constant 0 : i32
    %c0_i32_1 = arith.constant 0 : i32
    return %c0_i32, %c0_i32_0 : i32, i32
  }
  func.func @transform_5(%arg0: i32) -> (i32, i32) {
    %c0_i32 = arith.constant 0 : i32
    %c0_i32_0 = arith.constant 0 : i32
    %c0_i32_1 = arith.constant 0 : i32
    return %c0_i32, %c0_i32_0 : i32, i32
  }
  func.func @transform_6(%arg0: i32) -> (i32, i32) {
    %c0_i32 = arith.constant 0 : i32
    %c0_i32_0 = arith.constant 0 : i32
    %c0_i32_1 = arith.constant 0 : i32
    return %c0_i32, %c0_i32_0 : i32, i32
  }
  func.func @transform_7(%arg0: i32) -> (i32, i32) {
    %c0_i32 = arith.constant 0 : i32
    %c0_i32_0 = arith.constant 0 : i32
    %c0_i32_1 = arith.constant 0 : i32
    return %c0_i32, %c0_i32_0 : i32, i32
  }
  func.func @transform_8(%arg0: i32) -> (i32, i32, i32) {
    %c0_i32 = arith.constant 0 : i32
    %c0_i32_0 = arith.constant 0 : i32
    %c0_i32_1 = arith.constant 0 : i32
    return %arg0, %c0_i32, %c0_i32_0 : i32, i32, i32
  }
}

</mosaic_0001>

<bundles_post_ra>
// kernel: class_attention.1
= control target key start
LH: loop header
LB: loop body
LE: loop exit
PB: predicated region body
PF: predicated region fallthrough
CT: control target
= control target key end

     0   :  { %s3104_s0 = inlined_call_operand.hbm [shape: f32[4,256,128], index: 0, kind: input, shape index: {}]   ;;  %s3105_s1 = inlined_call_operand.hbm [shape: f32[128,128], index: 1, kind: input, shape index: {}]   ;;  %s3106_s2 = inlined_call_operand.vmem [shape: f32[1,128], index: 2, kind: input, shape index: {}]   ;;  %s3107_s3 = inlined_call_operand.hbm [shape: f32[128,256], index: 3, kind: input, shape index: {}]   ;;  %s3108_s4 = inlined_call_operand.vmem [shape: f32[1,256], index: 4, kind: input, shape index: {}]   ;;  %s3109_s5 = inlined_call_operand.hbm [shape: f32[128,128], index: 5, kind: input, shape index: {}]   ;;  %s3110_s6 = inlined_call_operand.vmem [shape: f32[1,128], index: 6, kind: input, shape index: {}]   ;;  %s3111_s7 = inlined_call_operand.vmem [shape: f32[4,128], index: 7, kind: input, shape index: {}]   ;;  %s3112_s8 = inlined_call_operand.hbm [shape: f32[4,1,128], index: 8, kind: output, shape index: {}]  }
   0x1   :  { %3125 = sst [smem:[#allocation33_spill]] %s3105_s1 }
   0x2   :  { %3126 = sst [smem:[#allocation34_spill]] %s3107_s3 }
   0x3   :  { %13 = vsyncpa [#allocation3], 0 }
   0x4   :  { %15 = vsyncpa [#allocation3 + $0x1], 0 }
   0x5   :  { %16 = vsyncpa [#allocation6], 0 }
   0x6   :  { %17 = vsyncpa [#allocation9], 0 }
   0x7   :  { %18 = vsyncpa [#allocation4], 0 }
   0x8   :  { %20 = vsyncpa [#allocation4 + $0x1], 0  ;;  %s2222_s27 = smov 0   ;;  %s2224_s28 = smov 0  }
   0x9   :  { %s2226_s29 = smov 0   ;;  %s2228_s30 = smov 0  }
   0xa LB: > { %s2243_s9 = sadd.s32 4294967295, %s2161_s30   ;;  %s1614_s10 = sadd.s32 4294967294, %s2161_s30   ;;  %s2161_s30 = sphi %s2228_s30, %s3208_s30   ;;  %s2157_s29 = sphi %s2226_s29, %s3207_s29   ;;  %s2153_s28 = sphi %s2224_s28, %s3206_s28   ;;  %s2149_s27 = sphi %s2222_s27, %s3205_s27  }
   0xb   : > { %p46_p0 = scmp.ne.s32.totalorder %s2153_s28, %s2149_s27  ;;  %p3115_p1 = scmp.eq.s32.totalorder %s2243_s9, 0 }
   0xc   : > { %p217_p2 = scmp.eq.s32.totalorder %s2243_s9, 1  ;;  %p223_p3 = scmp.eq.s32.totalorder %s1614_s10, 1 }
   0xd   : > { %p2252_p4 = por %p3115_p1, %p46_p0  ;;  %p1615_p5 = scmp.ge.s32.totalorder %s2161_s30, 1 }
   0xe   : > { %p2257_p6 = por %p223_p3, %p46_p0  ;;  %p230_p7 = scmp.lt.s32.totalorder %s2161_s30, 3 }
   0xf   : > { %s3127_s11 = scalar_select %p2252_p4, 1, 0 }
  0x10   : > { %s3128_s12 = scalar_select %p2257_p6, 1, 0 }
  0x11   : > { %p2262_p8 = pnand %p1615_p5, %p230_p7  ;;  %s2163_s14 = smov [#allocation5]  }
  0x12   : > { %s242_s15 = sshll.u32 %s2163_s14, 4  ;;  %s2164_s17 = smov [#allocation7]   ;;  %s243_s15 = int_to_ptr.vmem [resolvable:$true] %s242_s15 }
  0x13   : > { %s3129_s13 = scalar_select %p2262_p8, 1, 0 }
  0x14   : > { %p1900_p9 = pneg %p2262_p8  ;;  %s258_s18 = sshll.u32 %s2164_s17, 4  ;;  %s259_s18 = int_to_ptr.vmem [resolvable:$true] %s258_s18 }
  0x15   : > { %s1994_s19 = scalar_lea.vmem %s243_s15, 2048  ;;  %p2002_p5 = scmp.lt.s32.totalorder %s243_s15, %s243_s15 }
  0x16   : > { %p2271_p11 = pnand %p1900_p9, %p3115_p1  ;;  %p1995_p13 = scmp.ne.s32.totalorder %s243_s15, %s1994_s19 }
  0x17   : > { %p2003_p7 = scmp.lt.s32.totalorder %s1994_s19, %s1994_s19 }
  0x18   : > { %p1985_p12 = pneg %p2271_p11 }
  0x19   : > { %p2004_p10 = por %p2003_p7, %p2002_p5 }
  0x1a   : > { %p1997_p0 = pnand %p1995_p13, %p1985_p12 }
  0x1c   : > { %p1998_p3 = pneg %p1997_p0 }
  0x1e   : > { %p2005_p9 = pnand %p2004_p10, %p1998_p3 }
  0x20   : > { %2008 = shalt.err (!%p2005_p9)
}
  0x21   : > { %s3113_s20 = smov 128   ;;  %s3114_s21 = smov 8  }
  0x22   : > { %s3131_s1 = sld [smem:[#allocation33_spill]]  ;;  %s2020_s24 = scalar_lea.vmem %s259_s18, 4096 }
  0x23   : > { %p2021_p13 = scmp.ne.s32.totalorder %s259_s18, %s2020_s24  ;;  %p2028_p10 = scmp.lt.s32.totalorder %s259_s18, %s259_s18 }
  0x24   : > { %p2029_p3 = scmp.lt.s32.totalorder %s2020_s24, %s2020_s24 }
  0x25   : > { %p2023_p0 = pnand %p2021_p13, %p1985_p12 }
  0x26   : > { %p2030_p7 = por %p2029_p3, %p2028_p10 }
  0x27   : > { %p2024_p5 = pneg %p2023_p0 }
  0x28   : > { %1903 = dma.hbm_to_vmem [thread:$0]  (!%p2271_p11), %s3131_s1, 2048, %s243_s15, [#allocation6], %s3113_s20, %s3113_s20, %s3114_s21  }
  0x29   : > { %p2031_p9 = pnand %p2030_p7, %p2024_p5 }
  0x2b   : > { %2034 = shalt.err (!%p2031_p9)
}
  0x2c   : > { %s2167_s25 = smov 256   ;;  %s2168_s26 = smov 16  }
  0x2d   : > { %s3132_s3 = sld [smem:[#allocation34_spill]]  ;;  %s2169_s15 = smov [#allocation8]  }
  0x2e   : > { %s274_s17 = sshll.u32 %s2169_s15, 4  ;;  %s2297_s19 = sadd.s32 1, %s2161_s30   ;;  %s275_s17 = int_to_ptr.vmem [resolvable:$true] %s274_s17 }
  0x2f   : > { %s2046_s22 = scalar_lea.vmem %s275_s17, 2048  ;;  %p2054_p10 = scmp.lt.s32.totalorder %s275_s17, %s275_s17 }
  0x30   : > { %p2047_p13 = scmp.ne.s32.totalorder %s275_s17, %s2046_s22  ;;  %p2055_p3 = scmp.lt.s32.totalorder %s2046_s22, %s2046_s22 }
  0x32   : > { %p2049_p0 = pnand %p2047_p13, %p1985_p12  ;;  %p2056_p7 = por %p2055_p3, %p2054_p10 }
  0x33   : > { %1906 = dma.hbm_to_vmem [thread:$0]  (!%p2271_p11), %s3132_s3, 4096, %s259_s18, [#allocation6], %s2167_s25, %s2167_s25, %s2168_s26  }
  0x34   : > { %p2050_p5 = pneg %p2049_p0 }
  0x36   : > { %p2057_p9 = pnand %p2056_p7, %p2050_p5 }
  0x38   : > { %2060 = shalt.err (!%p2057_p9)
}
  0x39   : > { %1909 = dma.hbm_to_vmem [thread:$0]  (!%p2271_p11), %s3109_s5, 2048, %s275_s17, [#allocation9], %s3113_s20, %s3113_s20, %s3114_s21  }
  0x3a   : > { %s30_s24 = ssub.s32 %s2161_s30, %s2297_s19  ;;  %s33_s16 = sadd.s32 1, %s2157_s29 }
  0x3b   : > { %p31_p12 = scmp.eq.s32.totalorder %s30_s24, 0  ;;  %p40_p13 = scmp.ne.s32.totalorder %s2157_s29, %s2153_s28 }
  0x3c   : > { %p41_p0 = scmp.eq.s32.totalorder %s2161_s30, 0  ;;  %p1921_p5 = scmp.lt.s32.totalorder %s2161_s30, 2 }
  0x3d   : > { %s2318_s25 = scalar_select %p31_p12, %s2157_s29, %s33_s16  }
  0x3e   : > { %p42_p10 = por %p41_p0, %p40_p13  ;;  %p2322_p3 = por %p217_p2, %p40_p13 }
  0x3f   : > { %s294_s10 = sand.u32 1, %s2157_s29   ;;  %s1640_s14 = sshll.u32 %s2161_s30, 13 }
  0x40   : > { %s3133_s26 = scalar_select %p2322_p3, 1, 0 }
  0x41   : > { %s1620_s15 = sshll.u32 %s294_s10, 9  ;;  %s2331_s17 = scalar_lea.hbm %s3104_s0, %s1640_s14 }
  0x42   : > { %s298_s23 = scalar_lea.vmem [#allocation2], %s1620_s15  ;;  %p2333_p11 = pnand %p1921_p5, %p42_p10 }
  0x43   : > { %s306_s24 = sshll.u32 %s298_s23, 4  ;;  %s2339_s20 = scalar_lea.sflag [#allocation3], %s294_s10  ;;  %s2337_s24 = int_to_ptr.vmem [resolvable:$true] %s306_s24 }
  0x44   : > { %s2061_s21 = scalar_lea.hbm %s2331_s17, 8192  ;;  %p2063_p7 = pneg %p2333_p11 }
  0x45   : > { %p2062_p2 = scmp.ne.s32.totalorder %s2331_s17, %s2061_s21  ;;  %s2066_s15 = scalar_lea.hbm %s3104_s0, 16384 }
  0x46   : > { %p2067_p13 = scmp.lt.s32.totalorder %s2331_s17, %s3104_s0  ;;  %p2068_p0 = scmp.lt.s32.totalorder %s2066_s15, %s2061_s21 }
  0x47   : > { %p2064_p9 = pnand %p2063_p7, %p2062_p2 }
  0x48   : > { %p2069_p5 = por %p2068_p0, %p2067_p13 }
  0x49   : > { %p2065_p12 = pneg %p2064_p9 }
  0x4b   : > { %p2070_p10 = pnand %p2069_p5, %p2065_p12 }
  0x4d   : > { %2073 = shalt.err (!%p2070_p10)
}
  0x4e   : > { %s2074_s10 = scalar_lea.vmem %s2337_s24, 8192  ;;  %s2170_s1 = smov [#allocation2]  }
  0x4f   : > { %p2075_p1 = scmp.ne.s32.totalorder %s2337_s24, %s2074_s10  ;;  %s2079_s3 = sshll.u32 %s2170_s1, 4  ;;  %s2080_s3 = int_to_ptr.vmem [resolvable:$false] %s2079_s3 }
  0x50   : > { %s2081_s14 = scalar_lea.vmem %s2080_s3, 16384  ;;  %p2082_p9 = scmp.lt.s32.totalorder %s2337_s24, %s2080_s3 }
  0x51   : > { %p2077_p6 = pnand %p2075_p1, %p2063_p7  ;;  %p2083_p3 = scmp.lt.s32.totalorder %s2081_s14, %s2074_s10 }
  0x53   : > { %p2078_p2 = pneg %p2077_p6  ;;  %p2084_p4 = por %p2083_p3, %p2082_p9 }
  0x55   : > { %p2085_p8 = pnand %p2084_p4, %p2078_p2 }
  0x57   : > { %2088 = shalt.err (!%p2085_p8)
}
  0x58   : > { %s3135_s21 = smov 8   ;;  %s3136_s22 = smov 128  }
  0x59   : > { %1913 = dma.hbm_to_vmem [thread:$0]  (!%p2333_p11), %s2331_s17, 8192, %s2337_s24, %s2339_s20, %s3136_s22, %s3136_s22, %s3135_s21  }
  0x5a   : > { %p3137_p1 = scmp.ne.s32.totalorder %s3129_s13, 0 }
  0x5c   : > { %318 = sbr.rel (%p3137_p1) target bundleno = 2040 (0x7f8), region = 52 }
  0x61   : > { %s2366_s1 = sand.u32 1, %s2153_s28   ;;  %p3138_p4 = scmp.ne.s32.totalorder %s3127_s11, 0 }
  0x62   : > { %s1625_s3 = sshll.u32 %s2366_s1, 9  ;;  %s321_s15 = scalar_lea.sflag [#allocation3], %s2366_s1 }
  0x63   : > { %s2370_s18 = scalar_lea.vmem [#allocation2], %s1625_s3 }
  0x64   : > { %2132 = dma.done.wait (%p3138_p4), %s321_s15, 8192  }
  0x65   : > { %2134 = vsyncadd (%p3138_p4), %s321_s15, 4294959104  ;;  %p3139_p6 = scmp.eq.s32.totalorder %s2243_s9, 0 }
  0x67   : > { %2136 = dma.done.wait (%p3139_p6), [#allocation6], 6144   ;;  %p3140_p8 = pmov %p3139_p6 }
  0x68   : > { %p3141_p3 = pmov %p3139_p6 }
  0x69   : > { %2138 = vsyncadd (%p3140_p8), [#allocation6], 4294961152 }
  0x6a   : > { %2140 = dma.done.wait (%p3141_p3), [#allocation9], 2048   ;;  %p3142_p11 = pmov %p3141_p3 }
  0x6b   : > { %v3119_v0 = vmov 0.0   ;;  %v466_v1 = vld [vmem:[#allocation7 + $0xf8] sm:$0xff]  ;;  %v465_v2 = vld [vmem:[#allocation7 + $0xf0] sm:$0xff]  ;;  %v464_v3 = vld [vmem:[#allocation7 + $0xe8] sm:$0xff]  ;;  %vm2172_vm0 = vmmov 0   ;;  %vm954_vm1 = vcmask 1041409  }
  0x6c   : > { %2142 = vsyncadd (%p3142_p11), [#allocation9], 4294965248  ;;  %543 = vmatprep.mubr.f32.mxu0 %v3119_v0  ;;  %1814 = vmatprep.subr.mxu1 %v3119_v0  ;;  %v463_v4 = vld [vmem:[#allocation7 + $0xe0] sm:$0xff]  ;;  %v462_v5 = vld [vmem:[#allocation7 + $0xd8] sm:$0xff]  ;;  %vm1105_vm2 = vcmask 1043456   ;;  %vm1376_vm3 = vcmask 1040384  }
  0x6d   : > { %479 = vmatprep.subr.mxu0 %v466_v1  ;;  %v461_v6 = vld [vmem:[#allocation7 + $0xd0] sm:$0xff]  ;;  %v460_v7 = vld [vmem:[#allocation7 + $0xc8] sm:$0xff]  ;;  %v459_v8 = vld [vmem:[#allocation7 + $0xc0] sm:$0xff]  ;;  %1846 = vmatprep.mubr.msk.f32.mxu1 %vm2172_vm0, %v3119_v0  ;;  %s1629_s14 = sshll.u32 %s2366_s1, 1  ;;  %s1499_s17 = scalar_lea.sflag [#allocation4], %s2366_s1 }
  0x6e   : > { %480 = vmatpush1.msra.mxu0 %v465_v2  ;;  %v458_v9 = vld [vmem:[#allocation7 + $0xb8] sm:$0xff]  ;;  %v457_v10 = vld [vmem:[#allocation7 + $0xb0] sm:$0xff]  ;;  %v456_v11 = vld [vmem:[#allocation7 + $0xa8] sm:$0xff]  ;;  %s368_s3 = scalar_lea.vmem [#allocation10], %s1629_s14  ;;  %p3202_p12 = scmp.ne.s32.totalorder %s3133_s26, 0 }
  0x6f   : > { %481 = vmatprep.subr.mxu0 %v464_v3  ;;  %v455_v12 = vld [vmem:[#allocation7 + $0xa0] sm:$0xff]  ;;  %v454_v13 = vld [vmem:[#allocation7 + $0x98] sm:$0xff]  ;;  %v453_v14 = vld [vmem:[#allocation7 + $0x90] sm:$0xff]  ;;  %s1512_s15 = sshll.u32 %s368_s3, 4  ;;  %s3056_s15 = int_to_ptr.vmem [resolvable:$true] %s1512_s15 }
  0x70   : > { %482 = vmatpush1.msra.mxu0 %v463_v4  ;;  %v452_v15 = vld [vmem:[#allocation7 + $0x88] sm:$0xff]  ;;  %v451_v16 = vld [vmem:[#allocation7 + $0x80] sm:$0xff]  ;;  %v450_v17 = vld [vmem:[#allocation7 + $0x78] sm:$0xff]  ;;  %s2089_s24 = scalar_lea.vmem %s3056_s15, 32 }
  0x71   : > { %483 = vmatprep.subr.mxu0 %v462_v5  ;;  %v449_v18 = vld [vmem:[#allocation7 + $0x70] sm:$0xff]  ;;  %v448_v19 = vld [vmem:[#allocation7 + $0x68] sm:$0xff]  ;;  %v447_v20 = vld [vmem:[#allocation7 + $0x60] sm:$0xff]  ;;  %p2090_p7 = scmp.ne.s32.totalorder %s3056_s15, %s2089_s24 }
  0x72   : > { %484 = vmatpush1.msra.mxu0 %v461_v6  ;;  %v446_v21 = vld [vmem:[#allocation7 + $0x58] sm:$0xff]  ;;  %v445_v22 = vld [vmem:[#allocation7 + $0x50] sm:$0xff]  ;;  %v444_v23 = vld [vmem:[#allocation7 + $0x48] sm:$0xff] }
  0x73   : > { %485 = vmatprep.subr.mxu0 %v460_v7  ;;  %v443_v24 = vld [vmem:[#allocation7 + $0x40] sm:$0xff]  ;;  %v442_v25 = vld [vmem:[#allocation7 + $0x38] sm:$0xff]  ;;  %v441_v26 = vld [vmem:[#allocation7 + $0x30] sm:$0xff]  ;;  %p2091_p13 = pnand %p2090_p7, %p3202_p12 }
  0x74   : > { %486 = vmatpush1.msra.mxu0 %v459_v8  ;;  %v440_v27 = vld [vmem:[#allocation7 + $0x28] sm:$0xff]  ;;  %v439_v28 = vld [vmem:[#allocation7 + $0x20] sm:$0xff]  ;;  %v438_v29 = vld [vmem:[#allocation7 + $0x18] sm:$0xff] }
  0x75   : > { %487 = vmatprep.subr.mxu0 %v458_v9  ;;  %v437_v30 = vld [vmem:[#allocation7 + $0x10] sm:$0xff]  ;;  %v436_v31 = vld [vmem:[#allocation7 + $0x8] sm:$0xff]  ;;  %v435_v32 = vld [vmem:[#allocation7] sm:$0xff]  ;;  %p2092_p0 = pneg %p2091_p13 }
  0x76   : > { %488 = vmatpush1.msra.mxu0 %v457_v10  ;;  %v943_v33 = vld [vmem:[#allocation5 + $0x78] sm:$0xff]  ;;  %v942_v34 = vld [vmem:[#allocation5 + $0x70] sm:$0xff]  ;;  %v2387_v35 = vld [vmem:[%s2370_s18] sm:$0xff] }
  0x77   : > { %489 = vmatprep.subr.mxu0 %v456_v11  ;;  %1815 = vmatpush3.msra.mxu1 %v943_v33  ;;  %v941_v36 = vld [vmem:[#allocation5 + $0x68] sm:$0xff]  ;;  %v940_v37 = vld [vmem:[#allocation5 + $0x60] sm:$0xff]  ;;  %v939_v39 = vld [vmem:[#allocation5 + $0x58] sm:$0xff] }
  0x78   : > { %490 = vmatpush1.msra.mxu0 %v455_v12  ;;  %1816 = vmatprep.subr.mxu1 %v3119_v0  ;;  %v372_v38 = vld [vmem:[%s2370_s18 + $0x8] sm:$0xff]  ;;  %v938_v40 = vld [vmem:[#allocation5 + $0x50] sm:$0xff]  ;;  %v936_v43 = vld [vmem:[#allocation5 + $0x40] sm:$0xff] }
  0x79   : > { %491 = vmatprep.subr.mxu0 %v454_v13  ;;  %1817 = vmatpush3.msra.mxu1 %v942_v34  ;;  %v373_v41 = vld [vmem:[%s2370_s18 + $0x10] sm:$0xff]  ;;  %v937_v42 = vld [vmem:[#allocation5 + $0x48] sm:$0xff]  ;;  %v374_v44 = vld [vmem:[%s2370_s18 + $0x18] sm:$0xff] }
  0x7a   : > { %492 = vmatpush1.msra.mxu0 %v453_v14  ;;  %1818 = vmatprep.subr.mxu1 %v3119_v0  ;;  %v935_v45 = vld [vmem:[#allocation5 + $0x38] sm:$0xff]  ;;  %v934_v46 = vld [vmem:[#allocation5 + $0x30] sm:$0xff]  ;;  %v375_v47 = vld [vmem:[%s2370_s18 + $0x20] sm:$0xff] }
  0x7b   : > { %493 = vmatprep.subr.mxu0 %v452_v15  ;;  %1819 = vmatpush3.msra.mxu1 %v941_v36  ;;  %v933_v48 = vld [vmem:[#allocation5 + $0x28] sm:$0xff]  ;;  %v932_v49 = vld [vmem:[#allocation5 + $0x20] sm:$0xff]  ;;  %v931_v51 = vld [vmem:[#allocation5 + $0x18] sm:$0xff] }
  0x7c   : > { %494 = vmatpush1.msra.mxu0 %v451_v16  ;;  %1820 = vmatprep.subr.mxu1 %v3119_v0  ;;  %v376_v50 = vld [vmem:[%s2370_s18 + $0x28] sm:$0xff]  ;;  %v2414_v52 = vld [vmem:[%s2370_s18 + $0x100] sm:$0xff]  ;;  %v930_v53 = vld [vmem:[#allocation5 + $0x10] sm:$0xff] }
  0x7d   : > { %495 = vmatprep.subr.mxu0 %v450_v17  ;;  %1821 = vmatpush3.msra.mxu1 %v940_v37  ;;  %v377_v54 = vld [vmem:[%s2370_s18 + $0x30] sm:$0xff]  ;;  %v953_v55 = vrot.slane %v2414_v52, 7  ;;  %v929_v56 = vld [vmem:[#allocation5 + $0x8] sm:$0xff]  ;;  %v928_v57 = vld [vmem:[#allocation5] sm:$0xff] }
  0x7e   : > { %496 = vmatpush1.msra.mxu0 %v449_v18  ;;  %1822 = vmatprep.subr.mxu1 %v3119_v0  ;;  %v378_v58 = vld [vmem:[%s2370_s18 + $0x38] sm:$0xff]  ;;  %v379_v60 = vld [vmem:[%s2370_s18 + $0x40] sm:$0xff]  ;;  %v380_v61 = vld [vmem:[%s2370_s18 + $0x48] sm:$0xff] }
  0x7f   : > { %497 = vmatprep.subr.mxu0 %v448_v19  ;;  %1823 = vmatpush3.msra.mxu1 %v939_v39  ;;  %v955_v59 = vsel %vm954_vm1, %v953_v55, %v2387_v35  ;;  %v381_v62 = vld [vmem:[%s2370_s18 + $0x50] sm:$0xff]  ;;  %v382_v63 = vld [vmem:[%s2370_s18 + $0x58] sm:$0xff]  ;;  %v383_v1 = vld [vmem:[%s2370_s18 + $0x60] sm:$0xff] }
  0x80   : > { %498 = vmatpush1.msra.mxu0 %v447_v20  ;;  %1824 = vmatprep.subr.mxu1 %v3119_v0  ;;  %v384_v2 = vld [vmem:[%s2370_s18 + $0x68] sm:$0xff]  ;;  %v385_v3 = vld [vmem:[%s2370_s18 + $0x70] sm:$0xff]  ;;  %v386_v4 = vld [vmem:[%s2370_s18 + $0x78] sm:$0xff] }
  0x81   : > { %499 = vmatprep.subr.mxu0 %v446_v21  ;;  %1825 = vmatpush3.msra.mxu1 %v938_v40  ;;  %v387_v5 = vld [vmem:[%s2370_s18 + $0x80] sm:$0xff]  ;;  %v388_v6 = vld [vmem:[%s2370_s18 + $0x88] sm:$0xff]  ;;  %v389_v7 = vld [vmem:[%s2370_s18 + $0x90] sm:$0xff] }
  0x82   : > { %500 = vmatpush1.msra.mxu0 %v445_v22  ;;  %1826 = vmatprep.subr.mxu1 %v3119_v0  ;;  %v390_v8 = vld [vmem:[%s2370_s18 + $0x98] sm:$0xff]  ;;  %v391_v9 = vld [vmem:[%s2370_s18 + $0xa0] sm:$0xff]  ;;  %v392_v10 = vld [vmem:[%s2370_s18 + $0xa8] sm:$0xff] }
  0x83   : > { %501 = vmatprep.subr.mxu0 %v444_v23  ;;  %1827 = vmatpush3.msra.mxu1 %v937_v42  ;;  %v393_v11 = vld [vmem:[%s2370_s18 + $0xb0] sm:$0xff]  ;;  %v394_v12 = vld [vmem:[%s2370_s18 + $0xb8] sm:$0xff]  ;;  %v395_v13 = vld [vmem:[%s2370_s18 + $0xc0] sm:$0xff] }
  0x84   : > { %502 = vmatpush1.msra.mxu0 %v443_v24  ;;  %1828 = vmatprep.subr.mxu1 %v3119_v0  ;;  %v396_v14 = vld [vmem:[%s2370_s18 + $0xc8] sm:$0xff]  ;;  %v397_v15 = vld [vmem:[%s2370_s18 + $0xd0] sm:$0xff]  ;;  %v398_v16 = vld [vmem:[%s2370_s18 + $0xd8] sm:$0xff] }
  0x85   : > { %503 = vmatprep.subr.mxu0 %v442_v25  ;;  %1829 = vmatpush3.msra.mxu1 %v936_v43  ;;  %v399_v17 = vld [vmem:[%s2370_s18 + $0xe0] sm:$0xff]  ;;  %v400_v18 = vld [vmem:[%s2370_s18 + $0xe8] sm:$0xff]  ;;  %v401_v19 = vld [vmem:[%s2370_s18 + $0xf0] sm:$0xff] }
  0x86   : > { %504 = vmatpush1.msra.mxu0 %v441_v26  ;;  %1830 = vmatprep.subr.mxu1 %v3119_v0  ;;  %v402_v20 = vld [vmem:[%s2370_s18 + $0xf8] sm:$0xff] }
  0x87   : > { %505 = vmatprep.subr.mxu0 %v440_v27  ;;  %1831 = vmatpush3.msra.mxu1 %v935_v45 }
  0x88   : > { %506 = vmatpush1.msra.mxu0 %v439_v28  ;;  %1832 = vmatprep.subr.mxu1 %v3119_v0 }
  0x89   : > { %507 = vmatprep.subr.mxu0 %v438_v29  ;;  %1833 = vmatpush3.msra.mxu1 %v934_v46 }
  0x8a   : > { %508 = vmatpush1.msra.mxu0 %v437_v30  ;;  %1834 = vmatprep.subr.mxu1 %v3119_v0 }
  0x8b   : > { %509 = vmatprep.subr.mxu0 %v436_v31  ;;  %1835 = vmatpush3.msra.mxu1 %v933_v48 }
  0x8c   : > { %510 = vmatpush1.msra.mxu0 %v435_v32  ;;  %1836 = vmatprep.subr.mxu1 %v3119_v0 }
  0x8d   : > { %544 = vmatmul.mubr.f32.vlgmr.msra.gmra.mxu0 %v2387_v35  ;;  %1837 = vmatpush3.msra.mxu1 %v932_v49 }
  0x8e   : > { %549 = vmatprep.mubr.f32.mxu0 %v3119_v0  ;;  %1838 = vmatprep.subr.mxu1 %v3119_v0 }
  0x8f   : > { %1839 = vmatpush3.msra.mxu1 %v931_v51 }
  0x90   : > { %1840 = vmatprep.subr.mxu1 %v3119_v0 }
  0x91   : > { %550 = vmatmul.mubr.f32.gmra.mxu0 %v372_v38  ;;  %1841 = vmatpush3.msra.mxu1 %v930_v53 }
  0x92   : > { %555 = vmatprep.mubr.f32.mxu0 %v3119_v0  ;;  %1842 = vmatprep.subr.mxu1 %v3119_v0 }
  0x93   : > { %1843 = vmatpush3.msra.mxu1 %v929_v56 }
  0x94   : > { %1844 = vmatprep.subr.mxu1 %v3119_v0 }
  0x95   : > { %556 = vmatmul.mubr.f32.gmra.mxu0 %v373_v41  ;;  %1845 = vmatpush3.msra.mxu1 %v928_v57 }
  0x96   : > { %561 = vmatprep.mubr.f32.mxu0 %v3119_v0  ;;  %1847 = vmatmul.mubr.f32.vlgmr.msra.gmra.mxu1 %v955_v59 }
  0x99   : > { %562 = vmatmul.mubr.f32.gmra.mxu0 %v374_v44  ;;  %v469_v44 = vlaneseq }
  0x9a   : > { %567 = vmatprep.mubr.f32.mxu0 %v3119_v0 }
  0x9b   : > { %v2530_v49 = vshrl.u32 %v469_v44, 7 }
  0x9d   : > { %568 = vmatmul.mubr.f32.gmra.mxu0 %v375_v47  ;;  %v1630_v47 = vld [vmem:[%s3106_s2] ss:$0 sm:$0xff]  ;;  %v471_v55 = vsub.s32 0, %v2530_v49 }
  0x9e   : > { %573 = vmatprep.mubr.f32.mxu0 %v3119_v0 }
  0xa1   : > { %574 = vmatmul.mubr.f32.gmra.mxu0 %v376_v50 }
  0xa2   : > { %579 = vmatprep.mubr.f32.mxu0 %v3119_v0 }
  0xa5   : > { %580 = vmatmul.mubr.f32.gmra.mxu0 %v377_v54 }
  0xa6   : > { %585 = vmatprep.mubr.f32.mxu0 %v3119_v0 }
  0xa9   : > { %586 = vmatmul.mubr.f32.gmra.mxu0 %v378_v58 }
  0xaa   : > { %591 = vmatprep.mubr.f32.mxu0 %v3119_v0 }
  0xad   : > { %592 = vmatmul.mubr.f32.gmra.mxu0 %v379_v60  ;;  %v2545_v60 = vld [vmem:[%s3111_s7] sm:$0xf] }
  0xae   : > { %597 = vmatprep.mubr.f32.mxu0 %v3119_v0  ;;  %3149 = vst [vmem:[#allocation21_spill] sm:$0xff] %v2545_v60 }
  0xb1   : > { %598 = vmatmul.mubr.f32.gmra.mxu0 %v380_v61 }
  0xb2   : > { %603 = vmatprep.mubr.f32.mxu0 %v3119_v0 }
  0xb5   : > { %604 = vmatmul.mubr.f32.gmra.mxu0 %v381_v62 }
  0xb6   : > { %609 = vmatprep.mubr.f32.mxu0 %v3119_v0 }
  0xb9   : > { %610 = vmatmul.mubr.f32.gmra.mxu0 %v382_v63 }
  0xba   : > { %615 = vmatprep.mubr.f32.mxu0 %v3119_v0 }
  0xbd   : > { %616 = vmatmul.mubr.f32.gmra.mxu0 %v383_v1 }
  0xbe   : > { %621 = vmatprep.mubr.f32.mxu0 %v3119_v0 }
  0xc1   : > { %622 = vmatmul.mubr.f32.gmra.mxu0 %v384_v2 }
  0xc2   : > { %627 = vmatprep.mubr.f32.mxu0 %v3119_v0 }
  0xc5   : > { %628 = vmatmul.mubr.f32.gmra.mxu0 %v385_v3 }
  0xc6   : > { %633 = vmatprep.mubr.f32.mxu0 %v3119_v0 }
  0xc9   : > { %634 = vmatmul.mubr.f32.gmra.mxu0 %v386_v4 }
  0xca   : > { %639 = vmatprep.mubr.f32.mxu0 %v3119_v0 }
  0xcd   : > { %640 = vmatmul.mubr.f32.gmra.mxu0 %v387_v5 }
  0xce   : > { %645 = vmatprep.mubr.f32.mxu0 %v3119_v0 }
  0xd1   : > { %646 = vmatmul.mubr.f32.gmra.mxu0 %v388_v6 }
  0xd2   : > { %651 = vmatprep.mubr.f32.mxu0 %v3119_v0 }
  0xd5   : > { %652 = vmatmul.mubr.f32.gmra.mxu0 %v389_v7 }
  0xd6   : > { %657 = vmatprep.mubr.f32.mxu0 %v3119_v0 }
  0xd9   : > { %658 = vmatmul.mubr.f32.gmra.mxu0 %v390_v8 }
  0xda   : > { %663 = vmatprep.mubr.f32.mxu0 %v3119_v0 }
  0xdd   : > { %664 = vmatmul.mubr.f32.gmra.mxu0 %v391_v9 }
  0xde   : > { %669 = vmatprep.mubr.f32.mxu0 %v3119_v0 }
  0xe1   : > { %670 = vmatmul.mubr.f32.gmra.mxu0 %v392_v10 }
  0xe2   : > { %675 = vmatprep.mubr.f32.mxu0 %v3119_v0 }
  0xe5   : > { %676 = vmatmul.mubr.f32.gmra.mxu0 %v393_v11 }
  0xe6   : > { %681 = vmatprep.mubr.f32.mxu0 %v3119_v0 }
  0xe9   : > { %682 = vmatmul.mubr.f32.gmra.mxu0 %v394_v12 }
  0xea   : > { %687 = vmatprep.mubr.f32.mxu0 %v3119_v0 }
  0xed   : > { %688 = vmatmul.mubr.f32.gmra.mxu0 %v395_v13 }
  0xee   : > { %693 = vmatprep.mubr.f32.mxu0 %v3119_v0 }
  0xf1   : > { %694 = vmatmul.mubr.f32.gmra.mxu0 %v396_v14 }
  0xf2   : > { %699 = vmatprep.mubr.f32.mxu0 %v3119_v0 }
  0xf5   : > { %700 = vmatmul.mubr.f32.gmra.mxu0 %v397_v15 }
  0xf6   : > { %705 = vmatprep.mubr.f32.mxu0 %v3119_v0 }
  0xf9   : > { %706 = vmatmul.mubr.f32.gmra.mxu0 %v398_v16 }
  0xfa   : > { %711 = vmatprep.mubr.f32.mxu0 %v3119_v0 }
  0xfd   : > { %712 = vmatmul.mubr.f32.gmra.mxu0 %v399_v17 }
  0xfe   : > { %717 = vmatprep.mubr.f32.mxu0 %v3119_v0 }
 0x101   : > { %718 = vmatmul.mubr.f32.gmra.mxu0 %v400_v18 }
 0x102   : > { %723 = vmatprep.mubr.f32.mxu0 %v3119_v0 }
 0x105   : > { %724 = vmatmul.mubr.f32.gmra.mxu0 %v401_v19 }
 0x106   : > { %729 = vmatprep.mubr.f32.mxu0 %v3119_v0 }
 0x109   : > { %730 = vmatmul.mubr.f32.gmra.mxu0 %v402_v20 }
 0x10a   : > { %735 = vmatprep.mubr.f32.mxu0 %v3119_v0 }
 0x10d   : > { %736 = vmatmul.mubr.f32.gmra.mxu0 %v2414_v52 }
 0x10e   : > { %741 = vmatprep.mubr.f32.mxu0 %v3119_v0 }
 0x14d   : > { %v2477_v21 = vpop.f32.mrf.mxu0 }
 0x14f   : > { %v2479_v22 = vpop.f32.mrf.mxu0 }
 0x150   : > { %3143 = vst [vmem:[#allocation15_spill] sm:$0xff] %v2479_v22 }
 0x151   : > { %v2481_v23 = vpop.f32.mrf.mxu0 }
 0x153   : > { %v2483_v24 = vpop.f32.mrf.mxu0 }
 0x154   : > { %3144 = vst [vmem:[#allocation16_spill] sm:$0xff] %v2483_v24 }
 0x155   : > { %v2485_v25 = vpop.f32.mrf.mxu0 }
 0x156   : > { %v1023_v48 = vpop.f32.mrf.mxu1 }
 0x157   : > { %v2487_v26 = vpop.f32.mrf.mxu0  ;;  %v1024_v51 = vadd.f32 %v1630_v47, %v1023_v48 }
 0x158   : > { %3145 = vst [vmem:[#allocation17_spill] sm:$0xff] %v2487_v26  ;;  %v1848_v52 = vpop.f32.mrf.mxu1 }
 0x159   : > { %v2489_v27 = vpop.f32.mrf.mxu0  ;;  %v2534_v54 = vmul.f32 0.17677669, %v1024_v51 }
 0x15b   : > { %v2491_v28 = vpop.f32.mrf.mxu0  ;;  %3148 = vst [vmem:[#allocation20_spill] sm:$0xff] %v2534_v54  ;;  %v1032_v58 = vrot.slane %v2534_v54, %v471_v55  ;;  %v2594_v54 = vld [vmem:[%s3108_s4] sm:$0x3] }
 0x15c   : > { %3146 = vst [vmem:[#allocation18_spill] sm:$0xff] %v2491_v28  ;;  %v2599_v24 = vrot.slane %v2594_v54, %v471_v55 }
 0x15d   : > { %v2493_v29 = vpop.f32.mrf.mxu0  ;;  %v2548_v62 = vmul.f32 %v1032_v58, %v2545_v60 }
 0x15f   : > { %v2495_v30 = vpop.f32.mrf.mxu0  ;;  %1691 = vmatprep.mubr.f32.mxu1 %v2548_v62 }
 0x160   : > { %3147 = vst [vmem:[#allocation19_spill] sm:$0xff] %v2495_v30 }
 0x161   : > { %v2497_v31 = vpop.f32.mrf.mxu0 }
 0x163   : > { %v2499_v32 = vpop.f32.mrf.mxu0 }
 0x165   : > { %v2501_v33 = vpop.f32.mrf.mxu0 }
 0x167   : > { %v2503_v34 = vpop.f32.mrf.mxu0 }
 0x169   : > { %v2505_v35 = vpop.f32.mrf.mxu0 }
 0x16b   : > { %v2507_v36 = vpop.f32.mrf.mxu0 }
 0x16d   : > { %v2509_v37 = vpop.f32.mrf.mxu0 }
 0x16f   : > { %v2511_v38 = vpop.f32.mrf.mxu0 }
 0x171   : > { %v2513_v39 = vpop.f32.mrf.mxu0 }
 0x173   : > { %v2515_v40 = vpop.f32.mrf.mxu0 }
 0x175   : > { %v2517_v41 = vpop.f32.mrf.mxu0 }
 0x177   : > { %v2519_v42 = vpop.f32.mrf.mxu0 }
 0x179   : > { %v2521_v43 = vpop.f32.mrf.mxu0 }
 0x17b   : > { %v2523_v45 = vpop.f32.mrf.mxu0 }
 0x17d   : > { %v2525_v46 = vpop.f32.mrf.mxu0 }
 0x17f   : > { %v2532_v50 = vpop.f32.mrf.mxu0 }
 0x181   : > { %v623_v53 = vpop.f32.mrf.mxu0 }
 0x183   : > { %v2537_v56 = vpop.f32.mrf.mxu0 }
 0x185   : > { %v629_v57 = vpop.f32.mrf.mxu0 }
 0x187   : > { %v2540_v59 = vpop.f32.mrf.mxu0 }
 0x189   : > { %v635_v61 = vpop.f32.mrf.mxu0 }
 0x18b   : > { %v2550_v63 = vpop.f32.mrf.mxu0 }
 0x18d   : > { %v2553_v1 = vpop.f32.mrf.mxu0 }
 0x18f   : > { %v2555_v2 = vpop.f32.mrf.mxu0 }
 0x190   : > { %3150 = vst [vmem:[#allocation22_spill] sm:$0xff] %v2555_v2 }
 0x191   : > { %v2557_v3 = vpop.f32.mrf.mxu0 }
 0x193   : > { %v2559_v4 = vpop.f32.mrf.mxu0 }
 0x194   : > { %3151 = vst [vmem:[#allocation23_spill] sm:$0xff] %v2559_v4 }
 0x195   : > { %v2561_v5 = vpop.f32.mrf.mxu0 }
 0x197   : > { %v2563_v6 = vpop.f32.mrf.mxu0 }
 0x198   : > { %3152 = vst [vmem:[#allocation24_spill] sm:$0xff] %v2563_v6  ;;  %v636_v6 = vadd.f32 %v635_v61, %v2599_v24  ;;  %v618_v61 = vadd.f32 %v2525_v46, %v2599_v24  ;;  %v600_v46 = vadd.f32 %v2513_v39, %v2599_v24  ;;  %v582_v39 = vadd.f32 %v2501_v33, %v2599_v24 }
 0x199   : > { %v2565_v7 = vpop.f32.mrf.mxu0  ;;  %v564_v33 = vadd.f32 %v2489_v27, %v2599_v24  ;;  %v642_v27 = vadd.f32 %v2553_v1, %v2599_v24 }
 0x19b   : > { %v2567_v8 = vpop.f32.mrf.mxu0 }
 0x19c   : > { %3153 = vst [vmem:[#allocation25_spill] sm:$0xff] %v2567_v8  ;;  %v630_v8 = vadd.f32 %v629_v57, %v2599_v24 }
 0x19d   : > { %v2569_v9 = vpop.f32.mrf.mxu0 }
 0x19f   : > { %v2571_v10 = vpop.f32.mrf.mxu0 }
 0x1a0   : > { %3154 = vst [vmem:[#allocation26_spill] sm:$0xff] %v2571_v10  ;;  %v624_v10 = vadd.f32 %v623_v53, %v2599_v24 }
 0x1a1   : > { %v671_v11 = vpop.f32.mrf.mxu0 }
 0x1a3   : > { %v2573_v12 = vpop.f32.mrf.mxu0 }
 0x1a5   : > { %v677_v13 = vpop.f32.mrf.mxu0 }
 0x1a7   : > { %v2575_v14 = vpop.f32.mrf.mxu0 }
 0x1a9   : > { %v683_v15 = vpop.f32.mrf.mxu0 }
 0x1aa   : > { %v684_v57 = vadd.f32 %v683_v15, %v2599_v24 }
 0x1ab   : > { %v2577_v16 = vpop.f32.mrf.mxu0 }
 0x1ad   : > { %v689_v17 = vpop.f32.mrf.mxu0 }
 0x1ae   : > { %v690_v53 = vadd.f32 %v689_v17, %v2599_v24 }
 0x1af   : > { %v2579_v18 = vpop.f32.mrf.mxu0 }
 0x1b1   : > { %v695_v19 = vpop.f32.mrf.mxu0 }
 0x1b3   : > { %v2581_v20 = vpop.f32.mrf.mxu0 }
 0x1b5   : > { %v701_v44 = vpop.f32.mrf.mxu0 }
 0x1b7   : > { %v2583_v47 = vpop.f32.mrf.mxu0 }
 0x1b9   : > { %v707_v48 = vpop.f32.mrf.mxu0 }
 0x1bb   : > { %v2585_v51 = vpop.f32.mrf.mxu0 }
 0x1bd   : > { %v713_v52 = vpop.f32.mrf.mxu0 }
 0x1be   : > { %v714_v55 = vadd.f32 %v713_v52, %v2599_v24 }
 0x1bf   : > { %v2587_v58 = vpop.f32.mrf.mxu0 }
 0x1c1   : > { %v719_v0 = vpop.f32.mrf.mxu0 }
 0x1c2   : > { %v720_v30 = vadd.f32 %v719_v0, %v2599_v24  ;;  %v702_v0 = vadd.f32 %v701_v44, %v2599_v24  ;;  %v3155_v44 = vld [vmem:[#allocation26_spill] sm:$0xff] }
 0x1c3   : > { %v2589_v60 = vpop.f32.mrf.mxu0 }
 0x1c5   : > { %v725_v22 = vpop.f32.mrf.mxu0 }
 0x1c6   : > { %v726_v28 = vadd.f32 %v725_v22, %v2599_v24  ;;  %v708_v22 = vadd.f32 %v707_v48, %v2599_v24  ;;  %v3157_v48 = vld [vmem:[#allocation25_spill] sm:$0xff] }
 0x1c7   : > { %v2596_v2 = vpop.f32.mrf.mxu0 }
 0x1c9   : > { %v731_v4 = vpop.f32.mrf.mxu0 }
 0x1ca   : > { %v732_v26 = vadd.f32 %v731_v4, %v2599_v24  ;;  %v678_v4 = vadd.f32 %v677_v13, %v2599_v24 }
 0x1cb   : > { %v733_v13 = vpop.f32.mrf.mxu0 }
 0x1cc   : > { %1659 = vmatprep.subr.mxu1 %v732_v26  ;;  %v612_v26 = vadd.f32 %v2521_v43, %v2599_v24  ;;  %v594_v43 = vadd.f32 %v2509_v37, %v2599_v24  ;;  %v576_v37 = vadd.f32 %v2497_v31, %v2599_v24  ;;  %v558_v31 = vadd.f32 %v2485_v25, %v2599_v24 }
 0x1cd   : > { %1660 = vmatpush3.xpose.msra.mxu1 %v636_v6  ;;  %v672_v6 = vadd.f32 %v671_v11, %v2599_v24  ;;  %v654_v11 = vadd.f32 %v2561_v5, %v2599_v24  ;;  %v546_v25 = vadd.f32 %v2477_v21, %v2599_v24 }
 0x1ce   : > { %1661 = vmatprep.subr.mxu1 %v726_v28  ;;  %v606_v28 = vadd.f32 %v2517_v41, %v2599_v24  ;;  %v588_v41 = vadd.f32 %v2505_v35, %v2599_v24  ;;  %v570_v35 = vadd.f32 %v2493_v29, %v2599_v24  ;;  %v3123_v29 = vsub.s32 1, %v2530_v49 }
 0x1d0   : > { %v2653_v5 = vrot.slane %v2594_v54, %v3123_v29 }
 0x1d1   : > { %1662 = vmatpush3.xpose.msra.mxu1 %v630_v8  ;;  %v666_v8 = vadd.f32 %v2569_v9, %v2599_v24  ;;  %v648_v9 = vadd.f32 %v2557_v3, %v2599_v24 }
 0x1d2   : > { %1663 = vmatprep.subr.mxu1 %v720_v30  ;;  %v696_v30 = vadd.f32 %v695_v19, %v2599_v24  ;;  %v734_v3 = vadd.f32 %v733_v13, %v2653_v5  ;;  %v728_v1 = vadd.f32 %v2596_v2, %v2653_v5  ;;  %v632_v54 = vadd.f32 %v2540_v59, %v2653_v5  ;;  %v419_v13 = vld [vmem:[%s2370_s18 + $0x180] sm:$0xff] }
 0x1d3   : > { %v722_v15 = vadd.f32 %v2589_v60, %v2653_v5  ;;  %v626_v21 = vadd.f32 %v2537_v56, %v2653_v5  ;;  %v620_v2 = vadd.f32 %v2532_v50, %v2653_v5  ;;  %v710_v59 = vadd.f32 %v2585_v51, %v2653_v5  ;;  %v3158_v51 = vld [vmem:[#allocation18_spill] sm:$0xff] }
 0x1d4   : > { %v614_v60 = vadd.f32 %v2523_v45, %v2653_v5  ;;  %v704_v56 = vadd.f32 %v2583_v47, %v2653_v5  ;;  %v698_v50 = vadd.f32 %v2581_v20, %v2653_v5  ;;  %v602_v17 = vadd.f32 %v2515_v40, %v2653_v5  ;;  %v3156_v47 = vld [vmem:[#allocation19_spill] sm:$0xff] }
 0x1d5   : > { %1664 = vmatpush3.xpose.msra.mxu1 %v624_v10  ;;  %v660_v10 = vadd.f32 %v2565_v7, %v2599_v24  ;;  %v552_v7 = vadd.f32 %v2481_v23, %v2599_v24  ;;  %v638_v23 = vadd.f32 %v2550_v63, %v2653_v5  ;;  %v716_v63 = vadd.f32 %v2587_v58, %v2653_v5  ;;  %v3160_v58 = vld [vmem:[#allocation17_spill] sm:$0xff] }
 0x1d6   : > { %1665 = vmatprep.subr.mxu1 %v714_v55  ;;  %v692_v45 = vadd.f32 %v2579_v18, %v2653_v5  ;;  %v596_v19 = vadd.f32 %v2511_v38, %v2653_v5  ;;  %v590_v20 = vadd.f32 %v2507_v36, %v2653_v5  ;;  %v680_v40 = vadd.f32 %v2575_v14, %v2653_v5 }
 0x1d7   : > { %v584_v18 = vadd.f32 %v2503_v34, %v2653_v5  ;;  %v674_v38 = vadd.f32 %v2573_v12, %v2653_v5  ;;  %v668_v36 = vadd.f32 %v3155_v44, %v2653_v5  ;;  %v572_v14 = vadd.f32 %v3156_v47, %v2653_v5 }
 0x1d8   : > { %v662_v34 = vadd.f32 %v3157_v48, %v2653_v5  ;;  %v566_v12 = vadd.f32 %v3158_v51, %v2653_v5  ;;  %v560_v55 = vadd.f32 %v3160_v58, %v2653_v5 }
 0x1d9   : > { %1666 = vmatpush3.xpose.msra.mxu1 %v618_v61  ;;  %v3161_v61 = vld [vmem:[#allocation23_spill] sm:$0xff] }
 0x1da   : > { %1667 = vmatprep.subr.mxu1 %v708_v22  ;;  %v650_v22 = vadd.f32 %v3161_v61, %v2653_v5 }
 0x1dd   : > { %1668 = vmatpush3.xpose.msra.mxu1 %v612_v26  ;;  %v3162_v26 = vld [vmem:[#allocation16_spill] sm:$0xff] }
 0x1de   : > { %1669 = vmatprep.subr.mxu1 %v702_v0  ;;  %v554_v0 = vadd.f32 %v3162_v26, %v2653_v5 }
 0x1e1   : > { %1670 = vmatpush3.xpose.msra.mxu1 %v606_v28  ;;  %v3163_v28 = vld [vmem:[#allocation22_spill] sm:$0xff] }
 0x1e2   : > { %1671 = vmatprep.subr.mxu1 %v696_v30  ;;  %v644_v30 = vadd.f32 %v3163_v28, %v2653_v5 }
 0x1e5   : > { %1672 = vmatpush3.xpose.msra.mxu1 %v600_v46  ;;  %v3164_v46 = vld [vmem:[#allocation15_spill] sm:$0xff] }
 0x1e6   : > { %1673 = vmatprep.subr.mxu1 %v690_v53  ;;  %v548_v53 = vadd.f32 %v3164_v46, %v2653_v5 }
 0x1e9   : > { %1674 = vmatpush3.xpose.msra.mxu1 %v594_v43  ;;  %v404_v43 = vld [vmem:[%s2370_s18 + $0x108] sm:$0xff] }
 0x1ea   : > { %1675 = vmatprep.subr.mxu1 %v684_v57  ;;  %742 = vmatmul.mubr.f32.gmra.mxu0 %v404_v43  ;;  %v3165_v57 = vmov 0.0  }
 0x1eb   : > { %747 = vmatprep.mubr.f32.mxu0 %v3165_v57 }
 0x1ed   : > { %1676 = vmatpush3.xpose.msra.mxu1 %v588_v41  ;;  %v405_v41 = vld [vmem:[%s2370_s18 + $0x110] sm:$0xff] }
 0x1ee   : > { %1677 = vmatprep.subr.mxu1 %v678_v4  ;;  %748 = vmatmul.mubr.f32.gmra.mxu0 %v405_v41  ;;  %v406_v4 = vld [vmem:[%s2370_s18 + $0x118] sm:$0xff] }
 0x1ef   : > { %753 = vmatprep.mubr.f32.mxu0 %v3165_v57 }
 0x1f1   : > { %1678 = vmatpush3.xpose.msra.mxu1 %v582_v39  ;;  %v407_v39 = vld [vmem:[%s2370_s18 + $0x120] sm:$0xff] }
 0x1f2   : > { %1679 = vmatprep.subr.mxu1 %v672_v6  ;;  %754 = vmatmul.mubr.f32.gmra.mxu0 %v406_v4  ;;  %v408_v6 = vld [vmem:[%s2370_s18 + $0x128] sm:$0xff] }
 0x1f3   : > { %759 = vmatprep.mubr.f32.mxu0 %v3165_v57 }
 0x1f5   : > { %1680 = vmatpush3.xpose.msra.mxu1 %v576_v37  ;;  %v409_v37 = vld [vmem:[%s2370_s18 + $0x130] sm:$0xff] }
 0x1f6   : > { %1681 = vmatprep.subr.mxu1 %v666_v8  ;;  %760 = vmatmul.mubr.f32.gmra.mxu0 %v407_v39  ;;  %v410_v8 = vld [vmem:[%s2370_s18 + $0x138] sm:$0xff] }
 0x1f7   : > { %765 = vmatprep.mubr.f32.mxu0 %v3165_v57 }
 0x1f9   : > { %1682 = vmatpush3.xpose.msra.mxu1 %v570_v35  ;;  %v411_v35 = vld [vmem:[%s2370_s18 + $0x140] sm:$0xff] }
 0x1fa   : > { %1683 = vmatprep.subr.mxu1 %v660_v10  ;;  %766 = vmatmul.mubr.f32.gmra.mxu0 %v408_v6  ;;  %v412_v10 = vld [vmem:[%s2370_s18 + $0x148] sm:$0xff] }
 0x1fb   : > { %771 = vmatprep.mubr.f32.mxu0 %v3165_v57 }
 0x1fd   : > { %1684 = vmatpush3.xpose.msra.mxu1 %v564_v33  ;;  %v413_v33 = vld [vmem:[%s2370_s18 + $0x150] sm:$0xff] }
 0x1fe   : > { %1685 = vmatprep.subr.mxu1 %v654_v11  ;;  %772 = vmatmul.mubr.f32.gmra.mxu0 %v409_v37  ;;  %v414_v11 = vld [vmem:[%s2370_s18 + $0x158] sm:$0xff] }
 0x1ff   : > { %777 = vmatprep.mubr.f32.mxu0 %v3165_v57 }
 0x201   : > { %1686 = vmatpush3.xpose.msra.mxu1 %v558_v31  ;;  %v415_v31 = vld [vmem:[%s2370_s18 + $0x160] sm:$0xff] }
 0x202   : > { %1687 = vmatprep.subr.mxu1 %v648_v9  ;;  %778 = vmatmul.mubr.f32.gmra.mxu0 %v410_v8  ;;  %v416_v9 = vld [vmem:[%s2370_s18 + $0x168] sm:$0xff] }
 0x203   : > { %783 = vmatprep.mubr.f32.mxu0 %v3165_v57 }
 0x205   : > { %1688 = vmatpush3.xpose.msra.mxu1 %v552_v7  ;;  %v417_v7 = vld [vmem:[%s2370_s18 + $0x170] sm:$0xff] }
 0x206   : > { %1689 = vmatprep.subr.mxu1 %v642_v27  ;;  %784 = vmatmul.mubr.f32.gmra.mxu0 %v411_v35  ;;  %v418_v27 = vld [vmem:[%s2370_s18 + $0x178] sm:$0xff] }
 0x207   : > { %789 = vmatprep.mubr.f32.mxu0 %v3165_v57 }
 0x209   : > { %1690 = vmatpush3.xpose.msra.mxu1 %v546_v25  ;;  %v420_v25 = vld [vmem:[%s2370_s18 + $0x188] sm:$0xff] }
 0x20a   : > { %1693 = vmatprep.subr.mxu1 %v734_v3  ;;  %790 = vmatmul.mubr.f32.gmra.mxu0 %v412_v10  ;;  %v421_v3 = vld [vmem:[%s2370_s18 + $0x190] sm:$0xff] }
 0x20b   : > { %795 = vmatprep.mubr.f32.mxu0 %v3165_v57 }
 0x20c   : > { %1692 = vmatmul.mubr.f32.vlgmr.msra.gmra.mxu1 %v2548_v62  ;;  %v608_v62 = vadd.f32 %v2519_v42, %v2653_v5  ;;  %v686_v42 = vadd.f32 %v2577_v16, %v2653_v5  ;;  %v578_v16 = vadd.f32 %v2499_v32, %v2653_v5  ;;  %v3159_v32 = vld [vmem:[#allocation24_spill] sm:$0xff] }
 0x20d   : > { %1694 = vmatpush3.msra.mxu1 %v638_v23  ;;  %v656_v52 = vadd.f32 %v3159_v32, %v2653_v5  ;;  %v422_v23 = vld [vmem:[%s2370_s18 + $0x198] sm:$0xff] }
 0x20e   : > { %1695 = vmatprep.subr.mxu1 %v728_v1  ;;  %796 = vmatmul.mubr.f32.gmra.mxu0 %v413_v33  ;;  %v423_v1 = vld [vmem:[%s2370_s18 + $0x1a0] sm:$0xff] }
 0x20f   : > { %1696 = vmatpush3.msra.mxu1 %v632_v54  ;;  %801 = vmatprep.mubr.f32.mxu0 %v3165_v57  ;;  %v424_v54 = vld [vmem:[%s2370_s18 + $0x1a8] sm:$0xff] }
 0x210   : > { %1697 = vmatprep.subr.mxu1 %v722_v15  ;;  %v425_v15 = vld [vmem:[%s2370_s18 + $0x1b0] sm:$0xff] }
 0x211   : > { %1698 = vmatpush3.msra.mxu1 %v626_v21  ;;  %v426_v21 = vld [vmem:[%s2370_s18 + $0x1b8] sm:$0xff] }
 0x212   : > { %1699 = vmatprep.subr.mxu1 %v716_v63  ;;  %802 = vmatmul.mubr.f32.gmra.mxu0 %v414_v11  ;;  %v427_v63 = vld [vmem:[%s2370_s18 + $0x1c0] sm:$0xff] }
 0x213   : > { %1700 = vmatpush3.msra.mxu1 %v620_v2  ;;  %807 = vmatprep.mubr.f32.mxu0 %v3165_v57  ;;  %v428_v2 = vld [vmem:[%s2370_s18 + $0x1c8] sm:$0xff] }
 0x214   : > { %1701 = vmatprep.subr.mxu1 %v710_v59  ;;  %v429_v59 = vld [vmem:[%s2370_s18 + $0x1d0] sm:$0xff] }
 0x215   : > { %1702 = vmatpush3.msra.mxu1 %v614_v60  ;;  %v430_v60 = vld [vmem:[%s2370_s18 + $0x1d8] sm:$0xff] }
 0x216   : > { %1703 = vmatprep.subr.mxu1 %v704_v56  ;;  %808 = vmatmul.mubr.f32.gmra.mxu0 %v415_v31  ;;  %v431_v56 = vld [vmem:[%s2370_s18 + $0x1e0] sm:$0xff] }
 0x217   : > { %1704 = vmatpush3.msra.mxu1 %v608_v62  ;;  %813 = vmatprep.mubr.f32.mxu0 %v3165_v57  ;;  %v432_v62 = vld [vmem:[%s2370_s18 + $0x1e8] sm:$0xff] }
 0x218   : > { %1705 = vmatprep.subr.mxu1 %v698_v50  ;;  %v433_v50 = vld [vmem:[%s2370_s18 + $0x1f0] sm:$0xff] }
 0x219   : > { %1706 = vmatpush3.msra.mxu1 %v602_v17  ;;  %v434_v17 = vld [vmem:[%s2370_s18 + $0x1f8] sm:$0xff]  ;;  %s1641_s18 = sshll.u32 %s2243_s9, 5  ;;  %s2174_s9 = smov [#allocation10]  }
 0x21a   : > { %1707 = vmatprep.subr.mxu1 %v692_v45  ;;  %814 = vmatmul.mubr.f32.gmra.mxu0 %v416_v9  ;;  %s3061_s20 = scalar_lea.hbm %s3112_s8, %s1641_s18  ;;  %s2093_s16 = sshll.u32 %s2174_s9, 4  ;;  %s2094_s16 = int_to_ptr.vmem [resolvable:$false] %s2093_s16 }
 0x21b   : > { %1708 = vmatpush3.msra.mxu1 %v596_v19  ;;  %819 = vmatprep.mubr.f32.mxu0 %v3165_v57  ;;  %s2095_s23 = scalar_lea.vmem %s2094_s16, 64  ;;  %p2096_p5 = scmp.lt.s32.totalorder %s3056_s15, %s2094_s16 }
 0x21c   : > { %1709 = vmatprep.subr.mxu1 %v686_v42  ;;  %p2097_p10 = scmp.lt.s32.totalorder %s2095_s23, %s2089_s24 }
 0x21d   : > { %1710 = vmatpush3.msra.mxu1 %v590_v20 }
 0x21e   : > { %1711 = vmatprep.subr.mxu1 %v680_v40  ;;  %820 = vmatmul.mubr.f32.gmra.mxu0 %v417_v7  ;;  %p2098_p2 = por %p2097_p10, %p2096_p5 }
 0x21f   : > { %1712 = vmatpush3.msra.mxu1 %v584_v18  ;;  %825 = vmatprep.mubr.f32.mxu0 %v3165_v57  ;;  %v2784_v18 = vpop.f32.mrf.mxu0 }
 0x220   : > { %1713 = vmatprep.subr.mxu1 %v674_v38  ;;  %p2099_p9 = pnand %p2098_p2, %p2092_p0 }
 0x221   : > { %1714 = vmatpush3.msra.mxu1 %v578_v16  ;;  %v2786_v38 = vpop.f32.mrf.mxu0 }
 0x222   : > { %1715 = vmatprep.subr.mxu1 %v668_v36  ;;  %826 = vmatmul.mubr.f32.gmra.mxu0 %v418_v27  ;;  %3166 = vst [vmem:[#allocation26_spill] sm:$0xff] %v2786_v38 }
 0x223   : > { %1716 = vmatpush3.msra.mxu1 %v572_v14  ;;  %831 = vmatprep.mubr.f32.mxu0 %v3165_v57 }
 0x224   : > { %1717 = vmatprep.subr.mxu1 %v662_v34 }
 0x225   : > { %1718 = vmatpush3.msra.mxu1 %v566_v12 }
 0x226   : > { %1719 = vmatprep.subr.mxu1 %v656_v52  ;;  %832 = vmatmul.mubr.f32.gmra.mxu0 %v419_v13 }
 0x227   : > { %1720 = vmatpush3.msra.mxu1 %v560_v55  ;;  %837 = vmatprep.mubr.f32.mxu0 %v3165_v57 }
 0x228   : > { %1721 = vmatprep.subr.mxu1 %v650_v22 }
 0x229   : > { %1722 = vmatpush3.msra.mxu1 %v554_v0 }
 0x22a   : > { %1723 = vmatprep.subr.mxu1 %v644_v30  ;;  %838 = vmatmul.mubr.f32.gmra.mxu0 %v420_v25 }
 0x22b   : > { %1724 = vmatpush3.msra.mxu1 %v548_v53  ;;  %843 = vmatprep.mubr.f32.mxu0 %v3165_v57 }
 0x22e   : > { %844 = vmatmul.mubr.f32.gmra.mxu0 %v421_v3 }
 0x22f   : > { %849 = vmatprep.mubr.f32.mxu0 %v3165_v57 }
 0x232   : > { %850 = vmatmul.mubr.f32.gmra.mxu0 %v422_v23 }
 0x233   : > { %855 = vmatprep.mubr.f32.mxu0 %v3165_v57 }
 0x236   : > { %856 = vmatmul.mubr.f32.gmra.mxu0 %v423_v1 }
 0x237   : > { %861 = vmatprep.mubr.f32.mxu0 %v3165_v57 }
 0x23a   : > { %862 = vmatmul.mubr.f32.gmra.mxu0 %v424_v54 }
 0x23b   : > { %867 = vmatprep.mubr.f32.mxu0 %v3165_v57 }
 0x23e   : > { %868 = vmatmul.mubr.f32.gmra.mxu0 %v425_v15 }
 0x23f   : > { %873 = vmatprep.mubr.f32.mxu0 %v3165_v57 }
 0x242   : > { %874 = vmatmul.mubr.f32.gmra.mxu0 %v426_v21 }
 0x243   : > { %879 = vmatprep.mubr.f32.mxu0 %v3165_v57 }
 0x246   : > { %880 = vmatmul.mubr.f32.gmra.mxu0 %v427_v63 }
 0x247   : > { %885 = vmatprep.mubr.f32.mxu0 %v3165_v57 }
 0x24a   : > { %886 = vmatmul.mubr.f32.gmra.mxu0 %v428_v2 }
 0x24b   : > { %891 = vmatprep.mubr.f32.mxu0 %v3165_v57 }
 0x24e   : > { %892 = vmatmul.mubr.f32.gmra.mxu0 %v429_v59 }
 0x24f   : > { %897 = vmatprep.mubr.f32.mxu0 %v3165_v57 }
 0x252   : > { %898 = vmatmul.mubr.f32.gmra.mxu0 %v430_v60 }
 0x253   : > { %903 = vmatprep.mubr.f32.mxu0 %v3165_v57 }
 0x256   : > { %904 = vmatmul.mubr.f32.gmra.mxu0 %v431_v56 }
 0x257   : > { %909 = vmatprep.mubr.f32.mxu0 %v3165_v57 }
 0x25a   : > { %910 = vmatmul.mubr.f32.gmra.mxu0 %v432_v62 }
 0x25b   : > { %915 = vmatprep.mubr.f32.mxu0 %v3165_v57 }
 0x25e   : > { %916 = vmatmul.mubr.f32.gmra.mxu0 %v433_v50 }
 0x25f   : > { %921 = vmatprep.mubr.f32.mxu0 %v3165_v57 }
 0x262   : > { %922 = vmatmul.mubr.f32.gmra.mxu0 %v434_v17 }
 0x2aa   : > { %v2788_v16 = vpop.f32.mrf.mxu0 }
 0x2ac   : > { %v2790_v44 = vpop.f32.mrf.mxu0 }
 0x2ad   : > { %3167 = vst [vmem:[#allocation19_spill] sm:$0xff] %v2790_v44 }
 0x2ae   : > { %v2792_v36 = vpop.f32.mrf.mxu0 }
 0x2b0   : > { %v2794_v47 = vpop.f32.mrf.mxu0 }
 0x2b1   : > { %3168 = vst [vmem:[#allocation25_spill] sm:$0xff] %v2794_v47 }
 0x2b2   : > { %v2796_v14 = vpop.f32.mrf.mxu0 }
 0x2b4   : > { %v2798_v48 = vpop.f32.mrf.mxu0 }
 0x2b5   : > { %3169 = vst [vmem:[#allocation18_spill] sm:$0xff] %v2798_v48 }
 0x2b6   : > { %v2800_v34 = vpop.f32.mrf.mxu0 }
 0x2b8   : > { %v2802_v51 = vpop.f32.mrf.mxu0 }
 0x2b9   : > { %3170 = vst [vmem:[#allocation24_spill] sm:$0xff] %v2802_v51 }
 0x2ba   : > { %v2804_v12 = vpop.f32.mrf.mxu0 }
 0x2bc   : > { %v2806_v32 = vpop.f32.mrf.mxu0 }
 0x2bd   : > { %3171 = vst [vmem:[#allocation17_spill] sm:$0xff] %v2806_v32 }
 0x2be   : > { %v2808_v52 = vpop.f32.mrf.mxu0 }
 0x2c0   : > { %v2810_v58 = vpop.f32.mrf.mxu0 }
 0x2c1   : > { %3172 = vst [vmem:[#allocation23_spill] sm:$0xff] %v2810_v58 }
 0x2c2   : > { %v2812_v55 = vpop.f32.mrf.mxu0 }
 0x2c4   : > { %v2814_v61 = vpop.f32.mrf.mxu0 }
 0x2c5   : > { %3173 = vst [vmem:[#allocation16_spill] sm:$0xff] %v2814_v61 }
 0x2c6   : > { %v2816_v22 = vpop.f32.mrf.mxu0 }
 0x2c8   : > { %v2818_v26 = vpop.f32.mrf.mxu0 }
 0x2ca   : > { %v2820_v0 = vpop.f32.mrf.mxu0 }
 0x2cc   : > { %v1100_v45 = vpop.f32.mrf.mxu1  ;;  %v2822_v28 = vpop.f32.mrf.mxu0 }
 0x2cd   : > { %v1106_v42 = vsel %vm1105_vm2, %v1100_v45, -inf }
 0x2ce   : > { %v1102_v19 = vpop.f32.mrf.mxu1  ;;  %v2824_v30 = vpop.f32.mrf.mxu0 }
 0x2cf   : > { %v1107_v20 = vsel %vm1105_vm2, %v1102_v19, -inf }
 0x2d0   : > { %v1108_v40 = vmax.f32 %v1106_v42, %v1107_v20  ;;  %v2826_v46 = vpop.f32.mrf.mxu0 }
 0x2d2   : > { %1109 = vmax.xlane.f32.xlu0 %v1108_v40  ;;  %v2828_v53 = vpop.f32.mrf.mxu0 }
 0x2d4   : > { %v2830_v43 = vpop.f32.mrf.mxu0 }
 0x2d6   : > { %v2832_v41 = vpop.f32.mrf.mxu0 }
 0x2d8   : > { %v2834_v4 = vpop.f32.mrf.mxu0 }
 0x2da   : > { %v2836_v39 = vpop.f32.mrf.mxu0 }
 0x2dc   : > { %v2838_v6 = vpop.f32.mrf.mxu0 }
 0x2de   : > { %v2840_v37 = vpop.f32.mrf.mxu0 }
 0x2e0   : > { %v2842_v8 = vpop.f32.mrf.mxu0 }
 0x2e2   : > { %v827_v35 = vpop.f32.mrf.mxu0 }
 0x2e3   : > { %v828_v58 = vadd.f32 %v827_v35, %v2599_v24 }
 0x2e4   : > { %v2844_v10 = vpop.f32.mrf.mxu0 }
 0x2e6   : > { %v2846_v33 = vpop.f32.mrf.mxu0 }
 0x2e8   : > { %v2848_v11 = vpop.f32.mrf.mxu0 }
 0x2e9   : > { %3174 = vst [vmem:[#allocation22_spill] sm:$0xff] %v2848_v11 }
 0x2ea   : > { %v2850_v31 = vpop.f32.mrf.mxu0 }
 0x2ec   : > { %v2852_v9 = vpop.f32.mrf.mxu0 }
 0x2ed   : > { %3175 = vst [vmem:[#allocation15_spill] sm:$0xff] %v2852_v9 }
 0x2ee   : > { %v2854_v7 = vpop.f32.mrf.mxu0 }
 0x2f0   : > { %v2856_v27 = vpop.f32.mrf.mxu0 }
 0x2f1   : > { %3176 = vst [vmem:[#allocation27_spill] sm:$0xff] %v2856_v27 }
 0x2f2   : > { %v2858_v13 = vpop.f32.mrf.mxu0 }
 0x2f4   : > { %v2860_v25 = vpop.f32.mrf.mxu0 }
 0x2f5   : > { %3177 = vst [vmem:[#allocation28_spill] sm:$0xff] %v2860_v25 }
 0x2f6   : > { %v2862_v3 = vpop.f32.mrf.mxu0 }
 0x2f8   : > { %v2864_v1 = vpop.f32.mrf.mxu0 }
 0x2f9   : > { %3178 = vst [vmem:[#allocation29_spill] sm:$0xff] %v2864_v1 }
 0x2fa   : > { %v2866_v21 = vpop.f32.mrf.mxu0 }
 0x2fc   : > { %v2868_v59 = vpop.f32.mrf.mxu0 }
 0x2fd   : > { %3179 = vst [vmem:[#allocation30_spill] sm:$0xff] %v2868_v59 }
 0x2fe   : > { %v2870_v60 = vpop.f32.mrf.mxu0 }
 0x300   : > { %v2872_v56 = vpop.f32.mrf.mxu0 }
 0x301   : > { %3180 = vst [vmem:[#allocation31_spill] sm:$0xff] %v2872_v56  ;;  %v3184_v56 = vld [vmem:[#allocation21_spill] sm:$0xff] }
 0x302   : > { %v2874_v62 = vpop.f32.mrf.mxu0 }
 0x303   : > { %v876_v35 = vadd.f32 %v2874_v62, %v2599_v24 }
 0x304   : > { %v2876_v50 = vpop.f32.mrf.mxu0 }
 0x305   : > { %3181 = vst [vmem:[#allocation32_spill] sm:$0xff] %v2876_v50 }
 0x306   : > { %v881_v17 = vpop.f32.mrf.mxu0 }
 0x308   : > { %v2878_v42 = vpop.f32.mrf.mxu0 }
 0x35b   : > { %v1110_v23 = vpop.xlane.xlu0 %1109 }
 0x35c   : > { %v1111_v54 = vsub.f32 %v1100_v45, %v1110_v23  ;;  %v1112_v15 = vsub.f32 %v1102_v19, %v1110_v23  ;;  %v887_v19 = vpop.f32.mrf.mxu0 }
 0x35e   : > { %v1113_v63 = vmul.f32 1.442695, %v1111_v54  ;;  %v1115_v2 = vmul.f32 1.442695, %v1112_v15  ;;  %v2882_v54 = vpop.f32.mrf.mxu0 }
 0x360   : > { %1970 = vpow2.f32 %v1113_v63  ;;  %v893_v63 = vpop.f32.mrf.mxu0 }
 0x361   : > { %1972 = vpow2.f32 %v1115_v2 }
 0x362   : > { %v2884_v2 = vpop.f32.mrf.mxu0 }
 0x364   : > { %v899_v29 = vpop.f32.mrf.mxu0 }
 0x366   : > { %v2886_v57 = vpop.f32.mrf.mxu0 }
 0x368   : > { %v905_v38 = vpop.f32.mrf.mxu0 }
 0x36a   : > { %v2888_v11 = vpop.f32.mrf.mxu0 }
 0x36c   : > { %v911_v44 = vpop.f32.mrf.mxu0 }
 0x36d   : > { %v1971_v45 = vpop.eup %1970 }
 0x36e   : > { %v1973_v20 = vpop.eup %1972  ;;  %v1117_v40 = vsel %vm1105_vm2, %v1971_v45, 0.0  ;;  %v2890_v9 = vpop.f32.mrf.mxu0 }
 0x36f   : > { %v1118_v23 = vsel %vm1105_vm2, %v1973_v20, 0.0 }
 0x370   : > { %v1119_v15 = vadd.f32 %v1118_v23, %v1117_v40  ;;  %v917_v47 = vpop.f32.mrf.mxu0  ;;  %v3182_v23 = vsub.s32 1, %v2530_v49 }
 0x371   : > { %v918_v50 = vadd.f32 %v917_v47, %v2599_v24  ;;  %v810_v47 = vadd.f32 %v2832_v41, %v2599_v24  ;;  %v792_v41 = vadd.f32 %v2820_v0, %v2599_v24  ;;  %v774_v0 = vadd.f32 %v2808_v52, %v2599_v24 }
 0x372   : > { %1120 = vadd.xlane.f32.xlu0 %v1119_v15  ;;  %v2892_v27 = vpop.f32.mrf.mxu0  ;;  %v3183_v15 = vld [vmem:[#allocation20_spill] sm:$0xff]  ;;  %v756_v52 = vadd.f32 %v2796_v14, %v2599_v24 }
 0x373   : > { %v1206_v51 = vrot.slane %v3183_v15, %v3182_v23  ;;  %v3192_v23 = vld [vmem:[#allocation24_spill] sm:$0xff] }
 0x374   : > { %v923_v48 = vpop.f32.mrf.mxu0  ;;  %v764_v15 = vadd.f32 %v3192_v23, %v2653_v5 }
 0x375   : > { %v924_v25 = vadd.f32 %v923_v48, %v2599_v24  ;;  %v2900_v61 = vmul.f32 %v1206_v51, %v3184_v56  ;;  %v822_v48 = vadd.f32 %v2840_v37, %v2599_v24  ;;  %v906_v51 = vadd.f32 %v905_v38, %v2599_v24 }
 0x376   : > { %v804_v37 = vadd.f32 %v2828_v53, %v2599_v24  ;;  %v888_v38 = vadd.f32 %v887_v19, %v2599_v24  ;;  %v786_v53 = vadd.f32 %v2816_v22, %v2599_v24  ;;  %v768_v22 = vadd.f32 %v2804_v12, %v2599_v24  ;;  %v925_v14 = vpop.f32.mrf.mxu0  ;;  %v3188_v19 = vld [vmem:[#allocation23_spill] sm:$0xff] }
 0x377   : > { %1728 = vmatprep.subr.mxu1 %v924_v25  ;;  %v912_v25 = vadd.f32 %v911_v44, %v2599_v24  ;;  %v894_v44 = vadd.f32 %v893_v63, %v2599_v24  ;;  %v858_v56 = vadd.f32 %v2862_v3, %v2599_v24  ;;  %v750_v12 = vadd.f32 %v2792_v36, %v2599_v24 }
 0x378   : > { %v840_v3 = vadd.f32 %v2850_v31, %v2599_v24  ;;  %v926_v62 = vadd.f32 %v925_v14, %v2653_v5  ;;  %v830_v36 = vadd.f32 %v2844_v10, %v2653_v5  ;;  %v920_v31 = vadd.f32 %v2892_v27, %v2653_v5  ;;  %v3185_v27 = vld [vmem:[#allocation32_spill] sm:$0xff] }
 0x379   : > { %v812_v10 = vadd.f32 %v2834_v4, %v2653_v5  ;;  %v890_v4 = vadd.f32 %v2882_v54, %v2653_v5  ;;  %v3190_v54 = vld [vmem:[#allocation17_spill] sm:$0xff] }
 0x37a   : > { %v770_v63 = vadd.f32 %v3190_v54, %v2653_v5 }
 0x3fb   : > { %v1121_v40 = vpop.xlane.xlu0 %1120 }
 0x3fc   : > { %1974 = vrcp.f32 %v1121_v40 }
 0x409   : > { %v1975_v1 = vpop.eup %1974 }
 0x40a   : > { %v1124_v32 = vmul.f32 %v1975_v1, %v1973_v20  ;;  %v1123_v59 = vmul.f32 %v1975_v1, %v1971_v45  ;;  %v870_v1 = vadd.f32 %v2870_v60, %v2599_v24  ;;  %v852_v60 = vadd.f32 %v2858_v13, %v2599_v24  ;;  %v3187_v45 = vld [vmem:[#allocation31_spill] sm:$0xff]  ;;  %v3189_v20 = vld [vmem:[#allocation30_spill] sm:$0xff] }
 0x40b   : > { %v834_v13 = vadd.f32 %v2846_v33, %v2599_v24  ;;  %v914_v33 = vadd.f32 %v2890_v9, %v2653_v5  ;;  %v788_v9 = vadd.f32 %v2818_v26, %v2653_v5  ;;  %v866_v26 = vadd.f32 %v3189_v20, %v2653_v5  ;;  %v1982_v20 = vld [vmem:[%s3111_s7] sm:$0xf] }
 0x40c   : > { %1189 = vmatprep.mubr.f32.mxu1 %v1124_v32  ;;  %v816_v32 = vadd.f32 %v2836_v39, %v2599_v24  ;;  %v798_v39 = vadd.f32 %v2824_v30, %v2599_v24  ;;  %v780_v30 = vadd.f32 %v2812_v55, %v2599_v24  ;;  %v762_v55 = vadd.f32 %v2800_v34, %v2599_v24 }
 0x40d   : > { %1190 = vmatmul.mubr.f32.vlgmr.msra.gmra.mxu1 %v1123_v59  ;;  %v864_v59 = vadd.f32 %v2866_v21, %v2599_v24  ;;  %v846_v21 = vadd.f32 %v2854_v7, %v2599_v24  ;;  %v744_v34 = vadd.f32 %v2788_v16, %v2599_v24  ;;  %v738_v7 = vadd.f32 %v2784_v18, %v2599_v24 }
 0x40e   : > { %1729 = vmatpush3.xpose.msra.mxu1 %v828_v58  ;;  %1760 = vmatprep.mubr.f32.mxu1 %v2900_v61  ;;  %v900_v58 = vadd.f32 %v899_v29, %v2599_v24  ;;  %v882_v29 = vadd.f32 %v881_v17, %v2599_v24  ;;  %v824_v16 = vadd.f32 %v2842_v8, %v2653_v5 }
 0x40f   : > { %1730 = vmatprep.subr.mxu1 %v918_v50  ;;  %v818_v24 = vadd.f32 %v2838_v6, %v2653_v5  ;;  %v908_v18 = vadd.f32 %v2888_v11, %v2653_v5  ;;  %v806_v8 = vadd.f32 %v2830_v43, %v2653_v5  ;;  %v896_v6 = vadd.f32 %v2884_v2, %v2653_v5  ;;  %v3186_v50 = vld [vmem:[#allocation16_spill] sm:$0xff]  ;;  %v3191_v2 = vld [vmem:[#allocation29_spill] sm:$0xff] }
 0x410   : > { %v800_v11 = vadd.f32 %v2826_v46, %v2653_v5  ;;  %v884_v43 = vadd.f32 %v2878_v42, %v2653_v5  ;;  %v878_v46 = vadd.f32 %v3185_v27, %v2653_v5  ;;  %v782_v17 = vadd.f32 %v3186_v50, %v2653_v5  ;;  %v1385_v27 = vld [vmem:[#allocation8 + $0x38] sm:$0xff]  ;;  %v1383_v50 = vld [vmem:[#allocation8 + $0x28] sm:$0xff] }
 0x411   : > { %v776_v42 = vadd.f32 %v3188_v19, %v2653_v5  ;;  %v860_v40 = vadd.f32 %v3191_v2, %v2653_v5  ;;  %v1379_v19 = vld [vmem:[#allocation8 + $0x8] sm:$0xff] }
 0x412   : > { %1731 = vmatpush3.xpose.msra.mxu1 %v822_v48  ;;  %v3193_v48 = vld [vmem:[#allocation28_spill] sm:$0xff] }
 0x413   : > { %1732 = vmatprep.subr.mxu1 %v912_v25  ;;  %v854_v25 = vadd.f32 %v3193_v48, %v2653_v5 }
 0x416   : > { %1733 = vmatpush3.xpose.msra.mxu1 %v816_v32  ;;  %v3194_v32 = vld [vmem:[#allocation18_spill] sm:$0xff] }
 0x417   : > { %1734 = vmatprep.subr.mxu1 %v906_v51  ;;  %v758_v51 = vadd.f32 %v3194_v32, %v2653_v5 }
 0x41a   : > { %1735 = vmatpush3.xpose.msra.mxu1 %v810_v47  ;;  %v3195_v47 = vld [vmem:[#allocation27_spill] sm:$0xff] }
 0x41b   : > { %1736 = vmatprep.subr.mxu1 %v900_v58  ;;  %v848_v58 = vadd.f32 %v3195_v47, %v2653_v5 }
 0x41e   : > { %1737 = vmatpush3.xpose.msra.mxu1 %v804_v37  ;;  %v3196_v37 = vld [vmem:[#allocation25_spill] sm:$0xff] }
 0x41f   : > { %1738 = vmatprep.subr.mxu1 %v894_v44  ;;  %v752_v44 = vadd.f32 %v3196_v37, %v2653_v5 }
 0x422   : > { %1739 = vmatpush3.xpose.msra.mxu1 %v798_v39  ;;  %v3197_v39 = vld [vmem:[#allocation15_spill] sm:$0xff] }
 0x423   : > { %1740 = vmatprep.subr.mxu1 %v888_v38  ;;  %v842_v38 = vadd.f32 %v3197_v39, %v2653_v5 }
 0x426   : > { %1741 = vmatpush3.xpose.msra.mxu1 %v792_v41  ;;  %v3198_v41 = vld [vmem:[#allocation19_spill] sm:$0xff] }
 0x427   : > { %1742 = vmatprep.subr.mxu1 %v882_v29  ;;  %v746_v29 = vadd.f32 %v3198_v41, %v2653_v5 }
 0x42a   : > { %1743 = vmatpush3.xpose.msra.mxu1 %v786_v53  ;;  %v3199_v53 = vld [vmem:[#allocation22_spill] sm:$0xff] }
 0x42b   : > { %1744 = vmatprep.subr.mxu1 %v876_v35  ;;  %v836_v35 = vadd.f32 %v3199_v53, %v2653_v5 }
 0x42e   : > { %1745 = vmatpush3.xpose.msra.mxu1 %v780_v30  ;;  %v3200_v30 = vld [vmem:[#allocation26_spill] sm:$0xff] }
 0x42f   : > { %1746 = vmatprep.subr.mxu1 %v870_v1  ;;  %v740_v1 = vadd.f32 %v3200_v30, %v2653_v5 }
 0x432   : > { %1747 = vmatpush3.xpose.msra.mxu1 %v774_v0  ;;  %v3201_v0 = vmov 0.0  }
 0x433   : > { %1748 = vmatprep.subr.mxu1 %v864_v59 }
 0x436   : > { %1749 = vmatpush3.xpose.msra.mxu1 %v768_v22 }
 0x437   : > { %1750 = vmatprep.subr.mxu1 %v858_v56 }
 0x43a   : > { %1751 = vmatpush3.xpose.msra.mxu1 %v762_v55 }
 0x43b   : > { %1752 = vmatprep.subr.mxu1 %v852_v60 }
 0x43e   : > { %1753 = vmatpush3.xpose.msra.mxu1 %v756_v52 }
 0x43f   : > { %1754 = vmatprep.subr.mxu1 %v846_v21 }
 0x442   : > { %1755 = vmatpush3.xpose.msra.mxu1 %v750_v12 }
 0x443   : > { %1756 = vmatprep.subr.mxu1 %v840_v3 }
 0x446   : > { %1757 = vmatpush3.xpose.msra.mxu1 %v744_v34 }
 0x447   : > { %1758 = vmatprep.subr.mxu1 %v834_v13 }
 0x44a   : > { %1759 = vmatpush3.xpose.msra.mxu1 %v738_v7 }
 0x44b   : > { %1762 = vmatprep.subr.mxu1 %v926_v62 }
 0x44d   : > { %1761 = vmatmul.mubr.f32.vlgmr.msra.gmra.mxu1 %v2900_v61  ;;  %v902_v61 = vadd.f32 %v2886_v57, %v2653_v5  ;;  %v794_v57 = vadd.f32 %v2822_v28, %v2653_v5  ;;  %v872_v28 = vadd.f32 %v3187_v45, %v2653_v5  ;;  %v1381_v45 = vld [vmem:[#allocation8 + $0x18] sm:$0xff] }
 0x44e   : > { %1763 = vmatpush3.msra.mxu1 %v830_v36 }
 0x44f   : > { %1764 = vmatprep.subr.mxu1 %v920_v31 }
 0x450   : > { %1765 = vmatpush3.msra.mxu1 %v824_v16 }
 0x451   : > { %1766 = vmatprep.subr.mxu1 %v914_v33 }
 0x452   : > { %1767 = vmatpush3.msra.mxu1 %v818_v24 }
 0x453   : > { %1768 = vmatprep.subr.mxu1 %v908_v18 }
 0x454   : > { %1769 = vmatpush3.msra.mxu1 %v812_v10 }
 0x455   : > { %1770 = vmatprep.subr.mxu1 %v902_v61  ;;  %v1393_v61 = vld [vmem:[#allocation8 + $0x78] sm:$0xff] }
 0x456   : > { %1771 = vmatpush3.msra.mxu1 %v806_v8  ;;  %v1392_v8 = vld [vmem:[#allocation8 + $0x70] sm:$0xff] }
 0x457   : > { %1772 = vmatprep.subr.mxu1 %v896_v6  ;;  %v1391_v6 = vld [vmem:[#allocation8 + $0x68] sm:$0xff] }
 0x458   : > { %1773 = vmatpush3.msra.mxu1 %v800_v11  ;;  %v1390_v11 = vld [vmem:[#allocation8 + $0x60] sm:$0xff] }
 0x459   : > { %1774 = vmatprep.subr.mxu1 %v890_v4  ;;  %v1389_v4 = vld [vmem:[#allocation8 + $0x58] sm:$0xff] }
 0x45a   : > { %1775 = vmatpush3.msra.mxu1 %v794_v57  ;;  %v1388_v57 = vld [vmem:[#allocation8 + $0x50] sm:$0xff] }
 0x45b   : > { %1776 = vmatprep.subr.mxu1 %v884_v43  ;;  %v1387_v43 = vld [vmem:[#allocation8 + $0x48] sm:$0xff] }
 0x45c   : > { %1777 = vmatpush3.msra.mxu1 %v788_v9  ;;  %v1386_v9 = vld [vmem:[#allocation8 + $0x40] sm:$0xff] }
 0x45d   : > { %1778 = vmatprep.subr.mxu1 %v878_v46  ;;  %v1384_v46 = vld [vmem:[#allocation8 + $0x30] sm:$0xff] }
 0x45e   : > { %1779 = vmatpush3.msra.mxu1 %v782_v17  ;;  %v1382_v17 = vld [vmem:[#allocation8 + $0x20] sm:$0xff] }
 0x45f   : > { %1780 = vmatprep.subr.mxu1 %v872_v28  ;;  %v1380_v28 = vld [vmem:[#allocation8 + $0x10] sm:$0xff] }
 0x460   : > { %1781 = vmatpush3.msra.mxu1 %v776_v42  ;;  %v1378_v42 = vld [vmem:[#allocation8] sm:$0xff] }
 0x461   : > { %1782 = vmatprep.subr.mxu1 %v866_v26 }
 0x462   : > { %1783 = vmatpush3.msra.mxu1 %v770_v63 }
 0x463   : > { %1784 = vmatprep.subr.mxu1 %v860_v40 }
 0x464   : > { %1785 = vmatpush3.msra.mxu1 %v764_v15 }
 0x465   : > { %1786 = vmatprep.subr.mxu1 %v854_v25 }
 0x466   : > { %1787 = vmatpush3.msra.mxu1 %v758_v51 }
 0x467   : > { %1788 = vmatprep.subr.mxu1 %v848_v58 }
 0x468   : > { %1789 = vmatpush3.msra.mxu1 %v752_v44 }
 0x469   : > { %1790 = vmatprep.subr.mxu1 %v842_v38 }
 0x46a   : > { %1791 = vmatpush3.msra.mxu1 %v746_v29 }
 0x46b   : > { %1792 = vmatprep.subr.mxu1 %v836_v35  ;;  %v2173_v35 = vmov 1966171168  }
 0x46c   : > { %1793 = vmatpush3.msra.mxu1 %v740_v1  ;;  %v1473_v30 = vunpack.c.l.s4 %v2173_v35 }
 0x46d   : > { %1849 = vmatprep.subr.mxu1 %v3201_v0 }
 0x46e   : > { %v1474_v1 = vunpack.c.0.s8 %v1473_v30 }
 0x4cd   : > { %v1725_v59 = vpop.f32.mrf.mxu1 }
 0x4cf   : > { %v1726_v22 = vpop.f32.mrf.mxu1 }
 0x4d0   : > { %v3021_v56 = vadd.f32 %v1726_v22, %v1725_v59  ;;  %v1477_v59 = vsub.s32 %v1474_v1, %v2530_v49 }
 0x4d2   : > { %v1195_v26 = vmul.f32 %v1982_v20, %v3021_v56 }
 0x4d4   : > { %v1196_v54 = vsel %vm1105_vm2, %v1195_v26, 0.0 }
 0x4d5   : > { %v1197_v63 = vrot.slane %v1196_v54, 4 }
 0x4d7   : > { %v1198_v40 = vadd.f32 %v1197_v63, %v1196_v54 }
 0x4d9   : > { %v1199_v25 = vrot.slane %v1198_v40, 2 }
 0x4db   : > { %v1200_v47 = vadd.f32 %v1199_v25, %v1198_v40 }
 0x4dd   : > { %v1201_v44 = vrot.slane %v1200_v47, 1 }
 0x4df   : > { %v1202_v41 = vadd.f32 %v1201_v44, %v1200_v47 }
 0x50d   : > { %v1274_v55 = vpop.f32.mrf.mxu1 }
 0x50e   : > { %v1279_v52 = vsel %vm1105_vm2, %v1274_v55, -inf }
 0x50f   : > { %v1276_v60 = vpop.f32.mrf.mxu1 }
 0x510   : > { %v1280_v21 = vsel %vm1105_vm2, %v1276_v60, -inf }
 0x511   : > { %v1281_v12 = vmax.f32 %v1279_v52, %v1280_v21 }
 0x513   : > { %1282 = vmax.xlane.f32.xlu1 %v1281_v12 }
 0x59c   : > { %v1283_v3 = vpop.xlane.xlu1 %1282 }
 0x59d   : > { %v1284_v34 = vsub.f32 %v1274_v55, %v1283_v3  ;;  %v1285_v5 = vsub.f32 %v1276_v60, %v1283_v3 }
 0x59f   : > { %v1286_v13 = vmul.f32 1.442695, %v1284_v34  ;;  %v1288_v14 = vmul.f32 1.442695, %v1285_v5 }
 0x5a1   : > { %1976 = vpow2.f32 %v1286_v13 }
 0x5a2   : > { %1978 = vpow2.f32 %v1288_v14 }
 0x5ae   : > { %v1977_v7 = vpop.eup %1976 }
 0x5af   : > { %v1979_v62 = vpop.eup %1978  ;;  %v1290_v36 = vsel %vm1105_vm2, %v1977_v7, 0.0 }
 0x5b0   : > { %v1291_v31 = vsel %vm1105_vm2, %v1979_v62, 0.0 }
 0x5b1   : > { %v1292_v16 = vadd.f32 %v1291_v31, %v1290_v36 }
 0x5b3   : > { %1293 = vadd.xlane.f32.xlu1 %v1292_v16 }
 0x63c   : > { %v1294_v33 = vpop.xlane.xlu1 %1293 }
 0x63d   : > { %1980 = vrcp.f32 %v1294_v33 }
 0x64a   : > { %v1981_v24 = vpop.eup %1980 }
 0x64b   : > { %v1297_v18 = vmul.f32 %v1981_v24, %v1979_v62  ;;  %v1296_v10 = vmul.f32 %v1981_v24, %v1977_v7 }
 0x64d   : > { %1362 = vmatprep.mubr.f32.mxu1 %v1297_v18 }
 0x64e   : > { %1363 = vmatmul.mubr.f32.vlgmr.msra.gmra.mxu1 %v1296_v10 }
 0x64f   : > { %1850 = vmatpush3.msra.mxu1 %v1393_v61  ;;  %1881 = vmatprep.mubr.msk.f32.mxu1 %vm2172_vm0, %v3201_v0 }
 0x650   : > { %1851 = vmatprep.subr.mxu1 %v3201_v0 }
 0x651   : > { %1852 = vmatpush3.msra.mxu1 %v1392_v8 }
 0x652   : > { %1853 = vmatprep.subr.mxu1 %v3201_v0 }
 0x653   : > { %1854 = vmatpush3.msra.mxu1 %v1391_v6 }
 0x654   : > { %1855 = vmatprep.subr.mxu1 %v3201_v0 }
 0x655   : > { %1856 = vmatpush3.msra.mxu1 %v1390_v11 }
 0x656   : > { %1857 = vmatprep.subr.mxu1 %v3201_v0 }
 0x657   : > { %1858 = vmatpush3.msra.mxu1 %v1389_v4 }
 0x658   : > { %1859 = vmatprep.subr.mxu1 %v3201_v0 }
 0x659   : > { %1860 = vmatpush3.msra.mxu1 %v1388_v57 }
 0x65a   : > { %1861 = vmatprep.subr.mxu1 %v3201_v0 }
 0x65b   : > { %1862 = vmatpush3.msra.mxu1 %v1387_v43 }
 0x65c   : > { %1863 = vmatprep.subr.mxu1 %v3201_v0 }
 0x65d   : > { %1864 = vmatpush3.msra.mxu1 %v1386_v9 }
 0x65e   : > { %1865 = vmatprep.subr.mxu1 %v3201_v0 }
 0x65f   : > { %1866 = vmatpush3.msra.mxu1 %v1385_v27 }
 0x660   : > { %1867 = vmatprep.subr.mxu1 %v3201_v0 }
 0x661   : > { %1868 = vmatpush3.msra.mxu1 %v1384_v46 }
 0x662   : > { %1869 = vmatprep.subr.mxu1 %v3201_v0 }
 0x663   : > { %1870 = vmatpush3.msra.mxu1 %v1383_v50 }
 0x664   : > { %1871 = vmatprep.subr.mxu1 %v3201_v0 }
 0x665   : > { %1872 = vmatpush3.msra.mxu1 %v1382_v17 }
 0x666   : > { %1873 = vmatprep.subr.mxu1 %v3201_v0 }
 0x667   : > { %1874 = vmatpush3.msra.mxu1 %v1381_v45 }
 0x668   : > { %1875 = vmatprep.subr.mxu1 %v3201_v0 }
 0x669   : > { %1876 = vmatpush3.msra.mxu1 %v1380_v28 }
 0x66a   : > { %1877 = vmatprep.subr.mxu1 %v3201_v0 }
 0x66b   : > { %1878 = vmatpush3.msra.mxu1 %v1379_v19 }
 0x66c   : > { %1879 = vmatprep.subr.mxu1 %v3201_v0  ;;  %v1631_v0 = vld [vmem:[%s3110_s6] ss:$0 sm:$0xff] }
 0x66d   : > { %1880 = vmatpush3.msra.mxu1 %v1378_v42 }
 0x70e   : > { %v1794_v2 = vpop.f32.mrf.mxu1 }
 0x710   : > { %v1795_v23 = vpop.f32.mrf.mxu1 }
 0x711   : > { %v1796_v15 = vadd.f32 %v1795_v23, %v1794_v2 }
 0x713   : > { %v1368_v48 = vmul.f32 %v1982_v20, %v1796_v15 }
 0x715   : > { %v1369_v32 = vsel %vm1105_vm2, %v1368_v48, 0.0 }
 0x716   : > { %v1370_v51 = vrot.slane %v1369_v32, 4 }
 0x718   : > { %v1371_v58 = vadd.f32 %v1370_v51, %v1369_v32 }
 0x71a   : > { %v1372_v37 = vrot.slane %v1371_v58, 2 }
 0x71c   : > { %v1373_v39 = vadd.f32 %v1372_v37, %v1371_v58 }
 0x71e   : > { %v1374_v38 = vrot.slane %v1373_v39, 1 }
 0x720   : > { %v1375_v29 = vadd.f32 %v1374_v38, %v1373_v39 }
 0x722   : > { %v1377_v53 = vsel %vm1376_vm3, %v1202_v41, %v1375_v29 }
 0x723   : > { %1882 = vmatmul.mubr.f32.vlgmr.msra.gmra.mxu1 %v1377_v53 }
 0x7e3   : > { %v1467_v22 = vpop.f32.mrf.mxu1 }
 0x7e4   : > { %v1468_v56 = vadd.f32 %v1631_v0, %v1467_v22 }
 0x7e5   : > { %v1883_v55 = vpop.f32.mrf.mxu1 }
 0x7e6   : > { %v1478_v60 = vrot.slane %v1468_v56, %v1477_v59 }
 0x7e8   : > { %v1479_v52 = vcombine.high %v1478_v60, %v1478_v60  ;;  %1632 = vst.sshfl [vmem:[%s368_s3] sm:$0x1 pattern:$0x73625140] %v1478_v60 }
 0x7ea   : > { %1633 = vst.sshfl [vmem:[%s368_s3 + $0x1] sm:$0x1 pattern:$0x73625140] %v1479_v52 }
 0x7eb   : > { %2102 = shalt.err (!%p2099_p9)
}
 0x7ec   : > { %s2103_s10 = scalar_lea.hbm %s3061_s20, 32  ;;  %s2107_s22 = scalar_lea.hbm %s3112_s8, 64 }
 0x7ed   : > { %p2104_p1 = scmp.ne.s32.totalorder %s3061_s20, %s2103_s10  ;;  %p2108_p8 = scmp.lt.s32.totalorder %s3061_s20, %s3112_s8 }
 0x7ee   : > { %p2109_p3 = scmp.lt.s32.totalorder %s2107_s22, %s2103_s10 }
 0x7ef   : > { %p2105_p4 = pnand %p2104_p1, %p3202_p12 }
 0x7f0   : > { %p2110_p11 = por %p2109_p3, %p2108_p8 }
 0x7f1   : > { %p2106_p6 = pneg %p2105_p4 }
 0x7f3   : > { %p2111_p7 = pnand %p2110_p11, %p2106_p6 }
 0x7f5   : > { %2114 = shalt.err (!%p2111_p7)
}
 0x7f6   : > { %s2175_s11 = smov 16   ;;  %s2176_s13 = smov 1  }
 0x7f7   : > { %1898 = dma.vmem_to_hbm [thread:$0]  (%p3202_p12), %s3056_s15, 32, %s3061_s20, %s1499_s17, %s2175_s11, %s2175_s11, %s2176_s13  }
 0x7f8 PF: > { %s1527_s24 = sand.u32 1, %s2149_s27   ;;  %p3203_p13 = scmp.ne.s32.totalorder %s3128_s12, 0 }
 0x7f9   : > { %p3204_p0 = scmp.ge.s32.totalorder %s2161_s30, 2  ;;  %s1528_s9 = scalar_lea.sflag [#allocation4], %s1527_s24 }
 0x7fb   : > { %p1915_p5 = pnand %p3204_p0, %p3203_p13 }
 0x7fd   : > { %p1916_p10 = pneg %p1915_p5 }
 0x7ff   : > { %2144 = dma.done.wait (%p1916_p10), %s1528_s9, 32  }
 0x800   : > { %2146 = vsyncadd (%p1916_p10), %s1528_s9, 4294967264  ;;  %p23_p2 = scmp.ge.s32.totalorder %s2297_s19, 4   ;;  %s3205_s27 = smov %s2153_s28 }
 0x801   : > { %s3206_s28 = smov %s2157_s29  ;;  %s3207_s29 = smov %s2318_s25 }
 0x802   : > { %s3208_s30 = smov %s2297_s19  ;;  %25 = sbr.rel (!%p23_p2) target bundleno = 10 (0xa), region = 109 }
 0x807   :  { %1533 = vsyncpa [#allocation3], 1 }
 0x808   :  { %1535 = vsyncpa [#allocation3 + $0x1], 1 }
 0x809   :  { %1536 = vsyncpa [#allocation6], 1 }
 0x80a   :  { %1537 = vsyncpa [#allocation9], 1 }
 0x80b   :  { %1538 = vsyncpa [#allocation4], 1 }
 0x80c   :  { %1540 = vsyncpa [#allocation4 + $0x1], 1 }

</bundles_post_ra>
